<compile_context>
chip_gen: v7x
topology: tpu7x:2x2x1
jax: 0.10.0
libtpu: 0.0.40
codegen_flags: <defaults>
</compile_context>

<pallas_src>
import functools

import jax
import jax.numpy as jnp
from jax.experimental import pallas as pl
from jax.experimental.pallas import tpu as pltpu


# ---------------------------------------------------------------------------
# Per-generation memory budgets (derived from the chip, not hard-coded).
# ---------------------------------------------------------------------------
def _vmem_capacity_bytes():
    try:
        info = pltpu.get_tpu_info()
        cap = int(getattr(info, "vmem_capacity_bytes", 0))
        if cap > 0:
            return cap
    except Exception:
        pass
    return 64 * 1024 * 1024  # conservative default (v7x per-TC VMEM)


_VMEM_CAP = _vmem_capacity_bytes()
# Scoped-VMEM limit: <= ~48 MiB on 64 MiB parts (v7x), up to 96 MiB on the
# 128 MiB parts (v5e/v6e).  v5e's small default scoped VMEM makes an explicit
# limit mandatory for the large tiles used below.
_VMEM_LIMIT_BYTES = int(min((_VMEM_CAP * 3) // 4, 96 * 1024 * 1024))
# Budget under which the WHOLE forward is fused into one pallas_call.
_FUSE_BUDGET_BYTES = _VMEM_CAP // 4
# Bigger weight tiles on 128 MiB parts (amortize per-grid-step overhead on
# d2's long N axis); conservative on 64 MiB v7x.
_DEFAULT_TILE = 2048 if _VMEM_CAP >= 100 * 1024 * 1024 else 1024


def _round_up(x, m):
    return ((x + m - 1) // m) * m


def _pick_tile(dim, target):
    """Largest multiple-of-128 divisor of `dim` that is <= target.

    `dim` is always a multiple of 128 here (guaranteed by init-time padding
    plus the wrapper-side padding), so 128 always qualifies and we never fall
    back to a full-width block.
    """
    assert dim % 128 == 0, dim
    t = min((target // 128) * 128, dim)
    t = max(t, 128)
    while t > 128 and dim % t != 0:
        t -= 128
    return t


# ============================================================================
# Tiled linear kernel (used for the two giant layers e0 and d2).
# ============================================================================
def _linear_act_kernel(x_ref, w_ref, b_ref, o_ref, *, activation):
    # grid = (N_tiles, K_tiles): reduction axis K is LAST ("arbitrary").
    k = pl.program_id(1)

    @pl.when(k == 0)
    def _():
        # Initialize the resident accumulator with the (broadcast) bias: the
        # epilogue then does no extra read-modify-write of the output block.
        o_ref[...] = jnp.zeros_like(o_ref) + b_ref[...].astype(jnp.float32)

    # Weights stream from HBM in bf16 (half the f32 bytes); upcast in VMEM and
    # accumulate in f32 directly into the output block (no separate scratch).
    o_ref[...] += jnp.dot(x_ref[...],
                          w_ref[...].astype(jnp.float32),
                          preferred_element_type=jnp.float32)

    if activation != "none":
        @pl.when(k == pl.num_programs(1) - 1)
        def _():
            y = o_ref[...]
            if activation == "relu":
                y = jnp.maximum(y, 0.0)
            else:  # sigmoid
                y = jax.nn.sigmoid(y)
            o_ref[...] = y


def pallas_linear(x, w, b, activation="none", *,
                  tk_target=_DEFAULT_TILE, tn_target=_DEFAULT_TILE):
    """y = act(x @ w + b).  x: (B, K) f32, w: (K, N) bf16/f32, b: (1, N) f32."""
    B, K = x.shape
    Kw, N = w.shape
    # Pad K / N to multiples of 128.  For the full-size model the weights are
    # already padded in init_params, so these are no-ops there; this is only a
    # safety net for ad-hoc shapes.
    Kp = _round_up(max(K, Kw), 128)
    Np = _round_up(N, 128)
    if K < Kp:
        x = jnp.pad(x, ((0, 0), (0, Kp - K)))
    if Kw < Kp or N < Np:
        w = jnp.pad(w, ((0, Kp - Kw), (0, Np - N)))
    if b.shape[1] < Np:
        b = jnp.pad(b, ((0, 0), (0, Np - b.shape[1])))

    tk = _pick_tile(Kp, tk_target)
    tn = _pick_tile(Np, tn_target)

    kernel = functools.partial(_linear_act_kernel, activation=activation)
    out = pl.pallas_call(
        kernel,
        out_shape=jax.ShapeDtypeStruct((B, Np), jnp.float32),
        grid_spec=pltpu.PrefetchScalarGridSpec(
            num_scalar_prefetch=0,
            grid=(Np // tn, Kp // tk),                    # K (reduction) LAST
            in_specs=[
                pl.BlockSpec((B, tk), lambda n, k: (0, k)),
                pl.BlockSpec((tk, tn), lambda n, k: (k, n)),
                pl.BlockSpec((1, tn), lambda n, k: (0, n)),
            ],
            out_specs=pl.BlockSpec((B, tn), lambda n, k: (0, n)),
        ),
        compiler_params=pltpu.CompilerParams(
            dimension_semantics=("parallel", "arbitrary"),
            vmem_limit_bytes=_VMEM_LIMIT_BYTES),
    )(x, w, b)
    return out[:, :N]


# ============================================================================
# Fused middle block: e1, e2, reparameterization, d0, d1 in ONE launch.
# ============================================================================
def _middle_fused_kernel(h_ref, eps_ref,
                         e1w, e1b, e2w, e2b, d0w, d0b, d1w, d1b,
                         h_out_ref, mean_ref, std_ref, *, J):
    f32 = jnp.float32

    def lin(a, w_ref, b_ref):
        return jnp.dot(a, w_ref[...].astype(f32),
                       preferred_element_type=f32) + b_ref[...]

    h = jnp.maximum(lin(h_ref[...], e1w, e1b), 0.0)
    code = lin(h, e2w, e2b)
    mean = code[:, :J]
    std = code[:, J:2 * J]
    z = mean + std * eps_ref[...]                  # reparameterization, fused
    h = jnp.maximum(lin(z, d0w, d0b), 0.0)
    h = jnp.maximum(lin(h, d1w, d1b), 0.0)
    h_out_ref[...] = h
    mean_ref[...] = mean
    std_ref[...] = std


def pallas_middle_fused(h, eps, params, J):
    """e1 + e2 + reparam + d0 + d1 with all weights VMEM-resident (~3 MB bf16
    for the full-size model): removes 3-4 kernel launches and the HBM
    round-trips of the tiny (B, hidden) intermediates."""
    B = h.shape[0]
    H1p = params["d1_w"].shape[1]
    kernel = functools.partial(_middle_fused_kernel, J=J)
    out_shape = (
        jax.ShapeDtypeStruct((B, H1p), jnp.float32),   # h (input to d2)
        jax.ShapeDtypeStruct((B, J), jnp.float32),     # mean
        jax.ShapeDtypeStruct((B, J), jnp.float32),     # std
    )
    return pl.pallas_call(
        kernel,
        out_shape=out_shape,
        compiler_params=pltpu.CompilerParams(vmem_limit_bytes=_VMEM_LIMIT_BYTES),
    )(h, eps,
      params["e1_w"], params["e1_b"], params["e2_w"], params["e2_b"],
      params["d0_w"], params["d0_b"], params["d1_w"], params["d1_b"])


# ============================================================================
# Path A: fully fused forward (single pallas_call) for small configs.
# (Gridless => single TensorCore, no DMA pipelining; the fuse budget is kept
#  conservative so v7x takes the tiled path for anything non-trivial.)
# ============================================================================
def _fused_forward_kernel(x_ref, eps_ref,
                          e0w, e0b, e1w, e1b, e2w, e2b,
                          d0w, d0b, d1w, d1b, d2w, d2b,
                          p_ref, mean_ref, std_ref, *, J):
    f32 = jnp.float32

    def lin(a, w_ref, b_ref):
        return jnp.dot(a, w_ref[...].astype(f32),
                       preferred_element_type=f32) + b_ref[...]

    h = jnp.maximum(lin(x_ref[...], e0w, e0b), 0.0)
    h = jnp.maximum(lin(h, e1w, e1b), 0.0)
    code = lin(h, e2w, e2b)
    mean = code[:, :J]
    std = code[:, J:2 * J]
    z = mean + std * eps_ref[...]
    h = jnp.maximum(lin(z, d0w, d0b), 0.0)
    h = jnp.maximum(lin(h, d1w, d1b), 0.0)
    p_ref[...] = jax.nn.sigmoid(lin(h, d2w, d2b))
    mean_ref[...] = mean
    std_ref[...] = std


def _forward_fused(params, x2d, eps, J):
    B, D = x2d.shape
    Din = params["e0_w"].shape[0]
    Dout = params["d2_w"].shape[1]
    if D < Din:
        x2d = jnp.pad(x2d, ((0, 0), (0, Din - D)))
    kernel = functools.partial(_fused_forward_kernel, J=J)
    out_shape = (
        jax.ShapeDtypeStruct((B, Dout), jnp.float32),
        jax.ShapeDtypeStruct((B, J), jnp.float32),
        jax.ShapeDtypeStruct((B, J), jnp.float32),
    )
    p, mean, std = pl.pallas_call(
        kernel,
        out_shape=out_shape,
        compiler_params=pltpu.CompilerParams(vmem_limit_bytes=_VMEM_LIMIT_BYTES),
    )(x2d, eps,
      params["e0_w"], params["e0_b"], params["e1_w"], params["e1_b"],
      params["e2_w"], params["e2_b"], params["d0_w"], params["d0_b"],
      params["d1_w"], params["d1_b"], params["d2_w"], params["d2_b"])
    return p[:, :D], mean, std


# ============================================================================
# Path B: tiled e0 / d2 + fused middle block (scales to the full-size model).
# ============================================================================
def _forward_tiled(params, x2d, eps, J, *,
                   tk_target=_DEFAULT_TILE, tn_target=_DEFAULT_TILE):
    D = x2d.shape[1]
    # e0: (D, H1) -- tiled, bf16 weight stream, fused ReLU.
    h = pallas_linear(x2d, params["e0_w"], params["e0_b"], "relu",
                      tk_target=tk_target, tn_target=tn_target)
    # e1, e2, reparam, d0, d1: one fused launch, weights resident.
    h, mean, std = pallas_middle_fused(h, eps, params, J)
    # d2: (H1, D) -- tiled, bf16 weight stream, fused sigmoid.
    p = pallas_linear(h, params["d2_w"], params["d2_b"], "sigmoid",
                      tk_target=tk_target, tn_target=tn_target)
    return p[:, :D], mean, std


# ============================================================================
# Dispatcher.
# ============================================================================
def bernoulli_mlp_forward(params, x, eps, J, *,
                          fuse_vmem_budget_bytes=_FUSE_BUDGET_BYTES,
                          tk_target=_DEFAULT_TILE, tn_target=_DEFAULT_TILE):
    B = x.shape[0]
    x2d = x.reshape(B, -1).astype(jnp.float32)            # x.view(batch, -1)

    # Estimated VMEM footprint of the fully fused kernel:
    #   stored params + f32 upcast of the largest weight + f32 activations.
    param_bytes = sum(int(v.size) * v.dtype.itemsize for v in params.values())
    largest_w = max(int(params[k].size) for k in params if k.endswith("_w"))
    Din = params["e0_w"].shape[0]
    Dout = params["d2_w"].shape[1]
    H1p = params["e0_w"].shape[1]
    H2p = params["e1_w"].shape[1]
    act_elems = B * (Din + Dout + H1p + H2p + 4 * J + int(eps.shape[1]))
    fused_bytes = param_bytes + 4 * largest_w + 4 * act_elems
    if fused_bytes <= fuse_vmem_budget_bytes:
        return _forward_fused(params, x2d, eps, J)
    return _forward_tiled(params, x2d, eps, J,
                          tk_target=tk_target, tn_target=tn_target)


# ============================================================================
# Parameter init (mirrors nn.Linear uniform(-1/sqrt(fan_in), +1/sqrt(fan_in)))
# ============================================================================
def init_params(key, D, H1, H2, J, *,
                weight_dtype=jnp.bfloat16, pad_multiple=128):
    """Weights stored (in, out) so y = x @ W + b.

    All feature dims are zero-padded to a multiple of `pad_multiple` at init
    (full-size model: 116412 -> 116480, 1164 -> 1280, 500 -> 512) so Pallas
    blocks are lane/sublane aligned; zero rows/cols are mathematically inert
    and the final output is sliced back to D.  Weights are stored bf16
    (streamed at half the HBM bytes; f32 accumulation in-kernel); biases f32.
    """
    assert J % pad_multiple == 0, "J must be a multiple of pad_multiple"
    pu = lambda v: _round_up(v, pad_multiple)
    layer_dims = {
        "e0": (D, H1), "e1": (H1, H2), "e2": (H2, 2 * J),
        "d0": (J, H2), "d1": (H2, H1), "d2": (H1, D),
    }
    params = {}
    for name, (fan_in, fan_out) in layer_dims.items():
        key, kw, kb = jax.random.split(key, 3)
        bound = 1.0 / jnp.sqrt(fan_in)
        w = jax.random.uniform(kw, (fan_in, fan_out), jnp.float32, -bound, bound)
        b = jax.random.uniform(kb, (1, fan_out), jnp.float32, -bound, bound)
        w = jnp.pad(w, ((0, pu(fan_in) - fan_in), (0, pu(fan_out) - fan_out)))
        b = jnp.pad(b, ((0, 0), (0, pu(fan_out) - fan_out)))
        params[name + "_w"] = w.astype(weight_dtype)
        params[name + "_b"] = b                            # bias kept f32
    return params


# ============================================================================
# Pure-jnp reference (same bf16-quantized weights, f32 math).
# ============================================================================
def reference_forward(params, x, eps, J):
    B = x.shape[0]
    h = x.reshape(B, -1).astype(jnp.float32)
    D = h.shape[1]

    def lin(a, wname, bname):
        w = params[wname].astype(jnp.float32)
        b = params[bname].astype(jnp.float32)
        if a.shape[1] < w.shape[0]:
            a = jnp.pad(a, ((0, 0), (0, w.shape[0] - a.shape[1])))
        return jnp.dot(a, w, precision=jax.lax.Precision.HIGHEST) + b

    h = jax.nn.relu(lin(h, "e0_w", "e0_b"))
    h = jax.nn.relu(lin(h, "e1_w", "e1_b"))
    code = lin(h, "e2_w", "e2_b")
    mean, std = code[:, :J], code[:, J:2 * J]
    z = mean + std * eps
    h = jax.nn.relu(lin(z, "d0_w", "d0_b"))
    h = jax.nn.relu(lin(h, "d1_w", "d1_b"))
    p = jax.nn.sigmoid(lin(h, "d2_w", "d2_b"))
    return p[:, :D], mean, std


if __name__ == "__main__":
    # Small shapes consistent with the module structure:
    # original: img (3,218,178) -> D=116412, hidden 1164 -> 500 -> 2*256
    # scaled:   img (3, 16, 16) -> D=768,    hidden 256  -> 128 -> 2*128
    B = 2
    C, H, W = 3, 16, 16
    D = C * H * W          # 768
    H1, H2 = 256, 128
    J = 128

    key = jax.random.PRNGKey(0)
    k_param, k_x, k_eps = jax.random.split(key, 3)

    params = init_params(k_param, D, H1, H2, J)
    x = jax.random.uniform(k_x, (B, C, H, W), jnp.float32)   # NCHW input
    eps = jax.random.normal(k_eps, (B, J), jnp.float32)      # torch.normal(0,1)

    # Reference.
    p_r, mean_r, std_r = reference_forward(params, x, eps, J)
    jax.block_until_ready((p_r, mean_r, std_r))

    # Path A: fully fused single-launch forward (dispatcher picks it here).
    p_f, mean_f, std_f = bernoulli_mlp_forward(params, x, eps, J)
    jax.block_until_ready((p_f, mean_f, std_f))

    # Path B: e0/d2 tiled + middle-fused launch, exercised with small tiles so
    # the N-parallel / K-reduction grid machinery is actually tested.
    p_t, mean_t, std_t = _forward_tiled(params, x.reshape(B, -1), eps, J,
                                        tk_target=256, tn_target=128)
    jax.block_until_ready((p_t, mean_t, std_t))

    checks = [
        (p_f, p_r), (mean_f, mean_r), (std_f, std_r),
        (p_t, p_r), (mean_t, mean_r), (std_t, std_r),
    ]
    for got, want in checks:
        assert got.shape == want.shape, (got.shape, want.shape)
        err = float(jnp.max(jnp.abs(got - want)))
        assert err < 1e-2, f"max abs err {err}"

    assert p_f.shape == (B, D) and mean_f.shape == (B, J) and std_f.shape == (B, J)
    assert bool(jnp.all((p_f >= 0.0) & (p_f <= 1.0)))

    print("KERNEL_OK")
</pallas_src>

<mosaic_0001>
module attributes {stable_mosaic.version = 11 : i64} {
  func.func @_fused_forward_kernel(%arg0: memref<2x768xf32, #tpu.memory_space<vmem>>, %arg1: memref<2x128xf32, #tpu.memory_space<vmem>>, %arg2: memref<768x256xbf16, #tpu.memory_space<vmem>>, %arg3: memref<1x256xf32, #tpu.memory_space<vmem>>, %arg4: memref<256x128xbf16, #tpu.memory_space<vmem>>, %arg5: memref<1x128xf32, #tpu.memory_space<vmem>>, %arg6: memref<128x256xbf16, #tpu.memory_space<vmem>>, %arg7: memref<1x256xf32, #tpu.memory_space<vmem>>, %arg8: memref<128x128xbf16, #tpu.memory_space<vmem>>, %arg9: memref<1x128xf32, #tpu.memory_space<vmem>>, %arg10: memref<128x256xbf16, #tpu.memory_space<vmem>>, %arg11: memref<1x256xf32, #tpu.memory_space<vmem>>, %arg12: memref<256x768xbf16, #tpu.memory_space<vmem>>, %arg13: memref<1x768xf32, #tpu.memory_space<vmem>>, %arg14: memref<2x768xf32, #tpu.memory_space<vmem>>, %arg15: memref<2x128xf32, #tpu.memory_space<vmem>>, %arg16: memref<2x128xf32, #tpu.memory_space<vmem>>) attributes {dimension_semantics = [], scalar_prefetch = 0 : i64, scratch_operands = 0 : i64, tpu.core_type = #tpu.core_type<tc>} {
    %c0 = arith.constant 0 : index
    %c0_0 = arith.constant 0 : index
    %0 = vector.load %arg0[%c0, %c0_0] : memref<2x768xf32, #tpu.memory_space<vmem>>, vector<2x768xf32>
    %c0_1 = arith.constant 0 : index
    %c0_2 = arith.constant 0 : index
    %1 = vector.load %arg2[%c0_1, %c0_2] : memref<768x256xbf16, #tpu.memory_space<vmem>>, vector<768x256xbf16>
    %2 = arith.extf %1 : vector<768x256xbf16> to vector<768x256xf32>
    %cst = arith.constant dense<0.000000e+00> : vector<2x256xf32>
    %3 = tpu.matmul %0, %2, %cst {dimension_numbers = #tpu.dot_dimension_numbers<[1], [0], [0], [1], [0, 0, 1, 1], [], []>} : vector<2x768xf32>, vector<768x256xf32>, vector<2x256xf32> -> vector<2x256xf32>
    %c0_3 = arith.constant 0 : index
    %c0_4 = arith.constant 0 : index
    %4 = vector.load %arg3[%c0_3, %c0_4] : memref<1x256xf32, #tpu.memory_space<vmem>>, vector<1x256xf32>
    %5 = vector.broadcast %4 : vector<1x256xf32> to vector<2x256xf32>
    %6 = arith.addf %3, %5 : vector<2x256xf32>
    %cst_5 = arith.constant 0.000000e+00 : f32
    %7 = vector.broadcast %cst_5 : f32 to vector<2x256xf32>
    %8 = arith.maximumf %6, %7 : vector<2x256xf32>
    %c0_6 = arith.constant 0 : index
    %c0_7 = arith.constant 0 : index
    %9 = vector.load %arg4[%c0_6, %c0_7] : memref<256x128xbf16, #tpu.memory_space<vmem>>, vector<256x128xbf16>
    %10 = arith.extf %9 : vector<256x128xbf16> to vector<256x128xf32>
    %cst_8 = arith.constant dense<0.000000e+00> : vector<2x128xf32>
    %11 = tpu.matmul %8, %10, %cst_8 {dimension_numbers = #tpu.dot_dimension_numbers<[1], [0], [0], [1], [0, 0, 1, 1], [], []>} : vector<2x256xf32>, vector<256x128xf32>, vector<2x128xf32> -> vector<2x128xf32>
    %c0_9 = arith.constant 0 : index
    %c0_10 = arith.constant 0 : index
    %12 = vector.load %arg5[%c0_9, %c0_10] : memref<1x128xf32, #tpu.memory_space<vmem>>, vector<1x128xf32>
    %13 = vector.broadcast %12 : vector<1x128xf32> to vector<2x128xf32>
    %14 = arith.addf %11, %13 : vector<2x128xf32>
    %cst_11 = arith.constant 0.000000e+00 : f32
    %15 = vector.broadcast %cst_11 : f32 to vector<2x128xf32>
    %16 = arith.maximumf %14, %15 : vector<2x128xf32>
    %c0_12 = arith.constant 0 : index
    %c0_13 = arith.constant 0 : index
    %17 = vector.load %arg6[%c0_12, %c0_13] : memref<128x256xbf16, #tpu.memory_space<vmem>>, vector<128x256xbf16>
    %18 = arith.extf %17 : vector<128x256xbf16> to vector<128x256xf32>
    %cst_14 = arith.constant dense<0.000000e+00> : vector<2x256xf32>
    %19 = tpu.matmul %16, %18, %cst_14 {dimension_numbers = #tpu.dot_dimension_numbers<[1], [0], [0], [1], [0, 0, 1, 1], [], []>} : vector<2x128xf32>, vector<128x256xf32>, vector<2x256xf32> -> vector<2x256xf32>
    %c0_15 = arith.constant 0 : index
    %c0_16 = arith.constant 0 : index
    %20 = vector.load %arg7[%c0_15, %c0_16] : memref<1x256xf32, #tpu.memory_space<vmem>>, vector<1x256xf32>
    %21 = vector.broadcast %20 : vector<1x256xf32> to vector<2x256xf32>
    %22 = arith.addf %19, %21 : vector<2x256xf32>
    %23 = vector.extract_strided_slice %22 {offsets = [0, 0], sizes = [2, 128], strides = [1, 1]} : vector<2x256xf32> to vector<2x128xf32>
    %24 = vector.extract_strided_slice %22 {offsets = [0, 128], sizes = [2, 128], strides = [1, 1]} : vector<2x256xf32> to vector<2x128xf32>
    %c0_17 = arith.constant 0 : index
    %c0_18 = arith.constant 0 : index
    %25 = vector.load %arg1[%c0_17, %c0_18] : memref<2x128xf32, #tpu.memory_space<vmem>>, vector<2x128xf32>
    %26 = arith.mulf %24, %25 : vector<2x128xf32>
    %27 = arith.addf %23, %26 : vector<2x128xf32>
    %c0_19 = arith.constant 0 : index
    %c0_20 = arith.constant 0 : index
    %28 = vector.load %arg8[%c0_19, %c0_20] : memref<128x128xbf16, #tpu.memory_space<vmem>>, vector<128x128xbf16>
    %29 = arith.extf %28 : vector<128x128xbf16> to vector<128x128xf32>
    %cst_21 = arith.constant dense<0.000000e+00> : vector<2x128xf32>
    %30 = tpu.matmul %27, %29, %cst_21 {dimension_numbers = #tpu.dot_dimension_numbers<[1], [0], [0], [1], [0, 0, 1, 1], [], []>} : vector<2x128xf32>, vector<128x128xf32>, vector<2x128xf32> -> vector<2x128xf32>
    %c0_22 = arith.constant 0 : index
    %c0_23 = arith.constant 0 : index
    %31 = vector.load %arg9[%c0_22, %c0_23] : memref<1x128xf32, #tpu.memory_space<vmem>>, vector<1x128xf32>
    %32 = vector.broadcast %31 : vector<1x128xf32> to vector<2x128xf32>
    %33 = arith.addf %30, %32 : vector<2x128xf32>
    %cst_24 = arith.constant 0.000000e+00 : f32
    %34 = vector.broadcast %cst_24 : f32 to vector<2x128xf32>
    %35 = arith.maximumf %33, %34 : vector<2x128xf32>
    %c0_25 = arith.constant 0 : index
    %c0_26 = arith.constant 0 : index
    %36 = vector.load %arg10[%c0_25, %c0_26] : memref<128x256xbf16, #tpu.memory_space<vmem>>, vector<128x256xbf16>
    %37 = arith.extf %36 : vector<128x256xbf16> to vector<128x256xf32>
    %cst_27 = arith.constant dense<0.000000e+00> : vector<2x256xf32>
    %38 = tpu.matmul %35, %37, %cst_27 {dimension_numbers = #tpu.dot_dimension_numbers<[1], [0], [0], [1], [0, 0, 1, 1], [], []>} : vector<2x128xf32>, vector<128x256xf32>, vector<2x256xf32> -> vector<2x256xf32>
    %c0_28 = arith.constant 0 : index
    %c0_29 = arith.constant 0 : index
    %39 = vector.load %arg11[%c0_28, %c0_29] : memref<1x256xf32, #tpu.memory_space<vmem>>, vector<1x256xf32>
    %40 = vector.broadcast %39 : vector<1x256xf32> to vector<2x256xf32>
    %41 = arith.addf %38, %40 : vector<2x256xf32>
    %cst_30 = arith.constant 0.000000e+00 : f32
    %42 = vector.broadcast %cst_30 : f32 to vector<2x256xf32>
    %43 = arith.maximumf %41, %42 : vector<2x256xf32>
    %c0_31 = arith.constant 0 : index
    %c0_32 = arith.constant 0 : index
    %44 = vector.load %arg12[%c0_31, %c0_32] : memref<256x768xbf16, #tpu.memory_space<vmem>>, vector<256x768xbf16>
    %45 = arith.extf %44 : vector<256x768xbf16> to vector<256x768xf32>
    %cst_33 = arith.constant dense<0.000000e+00> : vector<2x768xf32>
    %46 = tpu.matmul %43, %45, %cst_33 {dimension_numbers = #tpu.dot_dimension_numbers<[1], [0], [0], [1], [0, 0, 1, 1], [], []>} : vector<2x256xf32>, vector<256x768xf32>, vector<2x768xf32> -> vector<2x768xf32>
    %c0_34 = arith.constant 0 : index
    %c0_35 = arith.constant 0 : index
    %47 = vector.load %arg13[%c0_34, %c0_35] : memref<1x768xf32, #tpu.memory_space<vmem>>, vector<1x768xf32>
    %48 = vector.broadcast %47 : vector<1x768xf32> to vector<2x768xf32>
    %49 = arith.addf %46, %48 : vector<2x768xf32>
    %50 = arith.negf %49 : vector<2x768xf32>
    %51 = math.exp %50 : vector<2x768xf32>
    %cst_36 = arith.constant 1.000000e+00 : f32
    %52 = vector.broadcast %cst_36 : f32 to vector<2x768xf32>
    %53 = arith.addf %52, %51 : vector<2x768xf32>
    %54 = arith.divf %52, %53 : vector<2x768xf32>
    %c0_37 = arith.constant 0 : index
    %c0_38 = arith.constant 0 : index
    %55 = vector.load %arg14[%c0_37, %c0_38] : memref<2x768xf32, #tpu.memory_space<vmem>>, vector<2x768xf32>
    tpu.vector_store %arg14[%c0_37, %c0_38], %54 {strides = array<i32>} : memref<2x768xf32, #tpu.memory_space<vmem>>, vector<2x768xf32>,
    %c0_39 = arith.constant 0 : index
    %c0_40 = arith.constant 0 : index
    %56 = vector.load %arg15[%c0_39, %c0_40] : memref<2x128xf32, #tpu.memory_space<vmem>>, vector<2x128xf32>
    tpu.vector_store %arg15[%c0_39, %c0_40], %23 {strides = array<i32>} : memref<2x128xf32, #tpu.memory_space<vmem>>, vector<2x128xf32>,
    %c0_41 = arith.constant 0 : index
    %c0_42 = arith.constant 0 : index
    %57 = vector.load %arg16[%c0_41, %c0_42] : memref<2x128xf32, #tpu.memory_space<vmem>>, vector<2x128xf32>
    tpu.vector_store %arg16[%c0_41, %c0_42], %24 {strides = array<i32>} : memref<2x128xf32, #tpu.memory_space<vmem>>, vector<2x128xf32>,
    return
  }
}

</mosaic_0001>

<bundles_post_ra>
// kernel: tpu_custom_call.1
= control target key start
LH: loop header
LB: loop body
LE: loop exit
PB: predicated region body
PF: predicated region fallthrough
CT: control target
= control target key end

     0   :  { %s3724_s0 = inlined_call_operand.hbm [shape: f32[2,768], index: 0, kind: input, shape index: {}]   ;;  %s3725_s1 = inlined_call_operand.vmem [shape: f32[2,128], index: 1, kind: input, shape index: {}]   ;;  %s3726_s2 = inlined_call_operand.hbm [shape: bf16[768,256], index: 2, kind: input, shape index: {}]   ;;  %s3727_s3 = inlined_call_operand.vmem [shape: f32[1,256], index: 3, kind: input, shape index: {}]   ;;  %s3728_s4 = inlined_call_operand.hbm [shape: bf16[256,128], index: 4, kind: input, shape index: {}]   ;;  %s3729_s5 = inlined_call_operand.vmem [shape: f32[1,128], index: 5, kind: input, shape index: {}]   ;;  %s3730_s6 = inlined_call_operand.hbm [shape: bf16[128,256], index: 6, kind: input, shape index: {}]   ;;  %s3731_s7 = inlined_call_operand.vmem [shape: f32[1,256], index: 7, kind: input, shape index: {}]   ;;  %s3732_s8 = inlined_call_operand.hbm [shape: bf16[128,128], index: 8, kind: input, shape index: {}]   ;;  %s3733_s9 = inlined_call_operand.vmem [shape: f32[1,128], index: 9, kind: input, shape index: {}]   ;;  %s3734_s10 = inlined_call_operand.hbm [shape: bf16[128,256], index: 10, kind: input, shape index: {}]   ;;  %s3735_s11 = inlined_call_operand.vmem [shape: f32[1,256], index: 11, kind: input, shape index: {}]   ;;  %s3736_s12 = inlined_call_operand.hbm [shape: bf16[256,768], index: 12, kind: input, shape index: {}]   ;;  %s3737_s13 = inlined_call_operand.vmem [shape: f32[1,768], index: 13, kind: input, shape index: {}]   ;;  %s3738_s14 = inlined_call_operand.hbm [shape: f32[2,768], index: 14, kind: output, shape index: {0}]   ;;  %s3739_s15 = inlined_call_operand.hbm [shape: f32[2,128], index: 15, kind: output, shape index: {1}]   ;;  %s3740_s16 = inlined_call_operand.hbm [shape: f32[2,128], index: 16, kind: output, shape index: {2}]  }
   0x1   :  { %3743 = sst [smem:[#allocation24_spill]] %s3724_s0 }
   0x2   :  { %3744 = sst [smem:[#allocation25_spill]] %s3738_s14 }
   0x3   :  { %22 = vsyncpa [#allocation3], 0 }
   0x4   :  { %23 = vsyncpa [#allocation6], 0 }
   0x5   :  { %24 = vsyncpa [#allocation9], 0 }
   0x6   :  { %25 = vsyncpa [#allocation12], 0 }
   0x7   :  { %26 = vsyncpa [#allocation4], 0 }
   0x8   :  { %27 = vsyncpa [#allocation16], 0  ;;  %s3427_s21 = smov [#allocation5]   ;;  %s3195_s25 = scalar_lea.hbm %s3726_s2, 12288 }
   0x9   :  { %s45_s22 = sshll.u32 %s3427_s21, 4  ;;  %p3196_p0 = scmp.ne.s32.totalorder %s3726_s2, %s3195_s25  ;;  %s46_s22 = int_to_ptr.vmem [resolvable:$true] %s45_s22 }
   0xa   :  { %p3199_p1 = scmp.lt.u32.totalorder %s3195_s25, %s3726_s2 }
   0xc   :  { %p3201_p2 = pnand %p3199_p1, %p3196_p0 }
   0xe   :  { %3204 = shalt.err (!%p3201_p2)
}
   0xf   :  { %s3205_s30 = scalar_lea.vmem %s46_s22, 12288  ;;  %p3210_p4 = scmp.lt.s32.totalorder %s46_s22, %s46_s22 }
  0x10   :  { %p3206_p3 = scmp.ne.s32.totalorder %s46_s22, %s3205_s30  ;;  %p3211_p5 = scmp.lt.s32.totalorder %s3205_s30, %s3205_s30 }
  0x12   :  { %p3212_p6 = por %p3211_p5, %p3210_p4 }
  0x14   :  { %p3213_p7 = pnand %p3212_p6, %p3206_p3 }
  0x16   :  { %3216 = shalt.err (!%p3213_p7)
}
  0x17   :  { %s3428_s0 = smov 128   ;;  %s3429_s17 = smov 8  }
  0x18   :  { %51 = dma.hbm_to_vmem [thread:$0]  %s3726_s2, 12288, %s46_s22, [#allocation6], %s3428_s0, %s3428_s0, %s3429_s17  }
  0x19   :  { %s3430_s20 = smov [#allocation8]   ;;  %s3431_s23 = smov [#allocation11]  }
  0x1a   :  { %s73_s21 = sshll.u32 %s3430_s20, 4  ;;  %s101_s24 = sshll.u32 %s3431_s23, 4  ;;  %s74_s21 = int_to_ptr.vmem [resolvable:$true] %s73_s21  ;;  %s102_s24 = int_to_ptr.vmem [resolvable:$true] %s101_s24 }
  0x1b   :  { %s3217_s27 = scalar_lea.hbm %s3730_s6, 2048 }
  0x1c   :  { %p3218_p8 = scmp.ne.s32.totalorder %s3730_s6, %s3217_s27  ;;  %p3221_p9 = scmp.lt.u32.totalorder %s3217_s27, %s3730_s6 }
  0x1e   :  { %p3223_p10 = pnand %p3221_p9, %p3218_p8 }
  0x20   :  { %3226 = shalt.err (!%p3223_p10)
}
  0x21   :  { %s3227_s2 = scalar_lea.vmem %s74_s21, 2048  ;;  %p3232_p12 = scmp.lt.s32.totalorder %s74_s21, %s74_s21 }
  0x22   :  { %p3228_p11 = scmp.ne.s32.totalorder %s74_s21, %s3227_s2  ;;  %p3233_p13 = scmp.lt.s32.totalorder %s3227_s2, %s3227_s2 }
  0x24   :  { %p3234_p0 = por %p3233_p13, %p3232_p12 }
  0x26   :  { %p3235_p1 = pnand %p3234_p0, %p3228_p11 }
  0x28   :  { %3238 = shalt.err (!%p3235_p1)
}
  0x29   :  { %79 = dma.hbm_to_vmem [thread:$0]  %s3730_s6, 2048, %s74_s21, [#allocation9], %s3428_s0, %s3428_s0, %s3429_s17  }
  0x2a   :  { %s3239_s20 = scalar_lea.hbm %s3734_s10, 2048 }
  0x2b   :  { %p3240_p2 = scmp.ne.s32.totalorder %s3734_s10, %s3239_s20  ;;  %p3243_p3 = scmp.lt.u32.totalorder %s3239_s20, %s3734_s10 }
  0x2d   :  { %p3245_p4 = pnand %p3243_p3, %p3240_p2 }
  0x2f   :  { %3248 = shalt.err (!%p3245_p4)
}
  0x30   :  { %s3249_s28 = scalar_lea.vmem %s102_s24, 2048  ;;  %p3254_p6 = scmp.lt.s32.totalorder %s102_s24, %s102_s24 }
  0x31   :  { %p3250_p5 = scmp.ne.s32.totalorder %s102_s24, %s3249_s28  ;;  %p3255_p7 = scmp.lt.s32.totalorder %s3249_s28, %s3249_s28 }
  0x33   :  { %p3256_p8 = por %p3255_p7, %p3254_p6 }
  0x35   :  { %p3257_p9 = pnand %p3256_p8, %p3250_p5 }
  0x37   :  { %3260 = shalt.err (!%p3257_p9)
}
  0x38   :  { %107 = dma.hbm_to_vmem [thread:$0]  %s3734_s10, 2048, %s102_s24, [#allocation12], %s3428_s0, %s3428_s0, %s3429_s17  }
  0x39   :  { %s3432_s29 = smov [#allocation2]   ;;  %s3433_s2 = smov [#allocation7]  }
  0x3a   :  { %s34_s30 = sshll.u32 %s3432_s29, 4  ;;  %s59_s22 = sshll.u32 %s3433_s2, 4  ;;  %s35_s30 = int_to_ptr.vmem [resolvable:$true] %s34_s30  ;;  %s60_s22 = int_to_ptr.vmem [resolvable:$true] %s59_s22 }
  0x3b   :  { %s3745_s14 = sld [smem:[#allocation24_spill]] }
  0x41   :  { %s3261_s20 = scalar_lea.hbm %s3745_s14, 192 }
  0x42   :  { %p3262_p10 = scmp.ne.s32.totalorder %s3745_s14, %s3261_s20  ;;  %p3265_p11 = scmp.lt.u32.totalorder %s3261_s20, %s3745_s14 }
  0x44   :  { %p3267_p12 = pnand %p3265_p11, %p3262_p10 }
  0x46   :  { %3270 = shalt.err (!%p3267_p12)
}
  0x47   :  { %s3271_s10 = scalar_lea.vmem %s35_s30, 192  ;;  %p3276_p0 = scmp.lt.s32.totalorder %s35_s30, %s35_s30 }
  0x48   :  { %p3272_p13 = scmp.ne.s32.totalorder %s35_s30, %s3271_s10  ;;  %p3277_p1 = scmp.lt.s32.totalorder %s3271_s10, %s3271_s10 }
  0x4a   :  { %p3278_p2 = por %p3277_p1, %p3276_p0 }
  0x4c   :  { %p3279_p3 = pnand %p3278_p2, %p3272_p13 }
  0x4e   :  { %3282 = shalt.err (!%p3279_p3)
}
  0x4f   :  { %37 = dma.hbm_to_vmem [thread:$0]  %s3745_s14, 192, %s35_s30, [#allocation3]  }
  0x50   :  { %s3283_s6 = scalar_lea.hbm %s3728_s4, 2048 }
  0x51   :  { %p3284_p4 = scmp.ne.s32.totalorder %s3728_s4, %s3283_s6  ;;  %p3287_p5 = scmp.lt.u32.totalorder %s3283_s6, %s3728_s4 }
  0x53   :  { %p3289_p6 = pnand %p3287_p5, %p3284_p4 }
  0x55   :  { %3292 = shalt.err (!%p3289_p6)
}
  0x56   :  { %s3293_s19 = scalar_lea.vmem %s60_s22, 2048  ;;  %p3298_p8 = scmp.lt.s32.totalorder %s60_s22, %s60_s22 }
  0x57   :  { %p3294_p7 = scmp.ne.s32.totalorder %s60_s22, %s3293_s19  ;;  %p3299_p9 = scmp.lt.s32.totalorder %s3293_s19, %s3293_s19 }
  0x59   :  { %p3300_p10 = por %p3299_p9, %p3298_p8 }
  0x5b   :  { %p3301_p11 = pnand %p3300_p10, %p3294_p7 }
  0x5d   :  { %3304 = shalt.err (!%p3301_p11)
}
  0x5e   :  { %s3434_s30 = smov 64   ;;  %s3435_s14 = smov 4  }
  0x5f   :  { %65 = dma.hbm_to_vmem [thread:$0]  %s3728_s4, 2048, %s60_s22, [#allocation6], %s3434_s30, %s3434_s30, %s3435_s14  }
  0x60   :  { %s3436_s25 = smov [#allocation10]   ;;  %s3437_s27 = smov [#allocation13]  }
  0x61   :  { %s87_s26 = sshll.u32 %s3436_s25, 4  ;;  %s115_s10 = sshll.u32 %s3437_s27, 4  ;;  %s88_s26 = int_to_ptr.vmem [resolvable:$true] %s87_s26  ;;  %s116_s10 = int_to_ptr.vmem [resolvable:$true] %s115_s10 }
  0x62   :  { %s3305_s24 = scalar_lea.hbm %s3732_s8, 1024 }
  0x63   :  { %p3306_p12 = scmp.ne.s32.totalorder %s3732_s8, %s3305_s24  ;;  %p3309_p13 = scmp.lt.u32.totalorder %s3305_s24, %s3732_s8 }
  0x65   :  { %p3311_p0 = pnand %p3309_p13, %p3306_p12 }
  0x67   :  { %3314 = shalt.err (!%p3311_p0)
}
  0x68   :  { %s3315_s4 = scalar_lea.vmem %s88_s26, 1024  ;;  %p3320_p2 = scmp.lt.s32.totalorder %s88_s26, %s88_s26 }
  0x69   :  { %p3316_p1 = scmp.ne.s32.totalorder %s88_s26, %s3315_s4  ;;  %p3321_p3 = scmp.lt.s32.totalorder %s3315_s4, %s3315_s4 }
  0x6b   :  { %p3322_p4 = por %p3321_p3, %p3320_p2 }
  0x6d   :  { %p3323_p5 = pnand %p3322_p4, %p3316_p1 }
  0x6f   :  { %3326 = shalt.err (!%p3323_p5)
}
  0x70   :  { %93 = dma.hbm_to_vmem [thread:$0]  %s3732_s8, 1024, %s88_s26, [#allocation9], %s3434_s30, %s3434_s30, %s3435_s14  }
  0x71   :  { %s3327_s20 = scalar_lea.hbm %s3736_s12, 12288 }
  0x72   :  { %p3328_p6 = scmp.ne.s32.totalorder %s3736_s12, %s3327_s20  ;;  %p3331_p7 = scmp.lt.u32.totalorder %s3327_s20, %s3736_s12 }
  0x74   :  { %p3333_p8 = pnand %p3331_p7, %p3328_p6 }
  0x76   :  { %3336 = shalt.err (!%p3333_p8)
}
  0x77   :  { %s3337_s17 = scalar_lea.vmem %s116_s10, 12288  ;;  %p3342_p10 = scmp.lt.s32.totalorder %s116_s10, %s116_s10 }
  0x78   :  { %p3338_p9 = scmp.ne.s32.totalorder %s116_s10, %s3337_s17  ;;  %p3343_p11 = scmp.lt.s32.totalorder %s3337_s17, %s3337_s17 }
  0x7a   :  { %p3344_p12 = por %p3343_p11, %p3342_p10 }
  0x7c   :  { %p3345_p13 = pnand %p3344_p12, %p3338_p9 }
  0x7e   :  { %3348 = shalt.err (!%p3345_p13)
}
  0x7f   :  { %s3438_s8 = smov 384   ;;  %s3439_s30 = smov 24  }
  0x80   :  { %121 = dma.hbm_to_vmem [thread:$0]  %s3736_s12, 12288, %s116_s10, [#allocation12], %s3438_s8, %s3438_s8, %s3439_s30  }
  0x81   :  { %3415 = dma.done.wait [#allocation3], 192  }
  0x82   :  { %3416 = vsyncadd [#allocation3], 4294967104 }
  0x83   :  { %3417 = dma.done.wait [#allocation6], 14336  }
  0x84   :  { %3418 = vsyncadd [#allocation6], 4294952960 }
  0x85   :  { %3419 = dma.done.wait [#allocation9], 3072  }
  0x86   :  { %3420 = vsyncadd [#allocation9], 4294964224 }
  0x87   :  { %3421 = dma.done.wait [#allocation12], 14336  }
  0x88   :  { %3422 = vsyncadd [#allocation12], 4294952960  ;;  %v2834_v0 = vld [vmem:[#allocation5 + $0x4] ss:$8 sps:$4 sm:$0xff]   ;;  %v2836_v1 = vld [vmem:[#allocation5] ss:$8 sps:$4 sm:$0xff]   ;;  %v437_v7 = vlaneseq }
  0x89   :  { %2081 = vmatprep.subr.bf16.mxu0 %v2834_v0  ;;  %v2837_v2 = vld [vmem:[#allocation5 + $0x14] ss:$8 sps:$4 sm:$0xff]   ;;  %v2839_v3 = vld [vmem:[#allocation5 + $0x10] ss:$8 sps:$4 sm:$0xff]   ;;  %v2840_v4 = vld [vmem:[#allocation5 + $0x24] ss:$8 sps:$4 sm:$0xff]  }
  0x8a   :  { %2083 = vmatpush1.bf16.msra.mxu0 %v2836_v1  ;;  %v2842_v5 = vld [vmem:[#allocation5 + $0x20] ss:$8 sps:$4 sm:$0xff]   ;;  %v2843_v6 = vld [vmem:[#allocation5 + $0x34] ss:$8 sps:$4 sm:$0xff]   ;;  %v3440_v8 = vmov 1983009808  }
  0x8b   :  { %2085 = vmatprep.subr.bf16.mxu0 %v2837_v2  ;;  %v451_v9 = vunpack.c.l.s4 %v3440_v8  ;;  %v2845_v10 = vld [vmem:[#allocation5 + $0x30] ss:$8 sps:$4 sm:$0xff]   ;;  %v2846_v11 = vld [vmem:[#allocation5 + $0x44] ss:$8 sps:$4 sm:$0xff]   ;;  %v3625_v12 = vshrl.u32 %v437_v7, 7  ;;  %vm3443_vm0 = vmmov 0  }
  0x8c   :  { %v2848_v14 = vld [vmem:[#allocation5 + $0x40] ss:$8 sps:$4 sm:$0xff]   ;;  %v2849_v15 = vld [vmem:[#allocation5 + $0x54] ss:$8 sps:$4 sm:$0xff]   ;;  %v2851_v17 = vld [vmem:[#allocation5 + $0x50] ss:$8 sps:$4 sm:$0xff]  }
  0x8d   :  { %v452_v13 = vunpack.c.0.s8 %v451_v9  ;;  %v2852_v18 = vld [vmem:[#allocation5 + $0x64] ss:$8 sps:$4 sm:$0xff]   ;;  %v145_v19 = vld [vmem:[#allocation2] sm:$0xff]  ;;  %v2854_v21 = vld [vmem:[#allocation5 + $0x60] ss:$8 sps:$4 sm:$0xff]  }
  0x8e   :  { %2087 = vmatpush1.bf16.msra.mxu0 %v2839_v3  ;;  %v2855_v22 = vld [vmem:[#allocation5 + $0x74] ss:$8 sps:$4 sm:$0xff]   ;;  %v2857_v24 = vld [vmem:[#allocation5 + $0x70] ss:$8 sps:$4 sm:$0xff]   ;;  %v2858_v25 = vld [vmem:[#allocation5 + $0x84] ss:$8 sps:$4 sm:$0xff]   ;;  %v449_v39 = vcombine.high %v145_v19, %v145_v19 }
  0x8f   :  { %2089 = vmatprep.subr.bf16.mxu0 %v2840_v4  ;;  %v3628_v16 = vsub.s32 %v452_v13, %v3625_v12  ;;  %v2860_v26 = vld [vmem:[#allocation5 + $0x80] ss:$8 sps:$4 sm:$0xff]   ;;  %v2861_v27 = vld [vmem:[#allocation5 + $0x94] ss:$8 sps:$4 sm:$0xff]   ;;  %v2863_v28 = vld [vmem:[#allocation5 + $0x90] ss:$8 sps:$4 sm:$0xff]  }
  0x90   :  { %v2864_v29 = vld [vmem:[#allocation5 + $0xa4] ss:$8 sps:$4 sm:$0xff]   ;;  %v2866_v30 = vld [vmem:[#allocation5 + $0xa0] ss:$8 sps:$4 sm:$0xff]   ;;  %v2867_v31 = vld [vmem:[#allocation5 + $0xb4] ss:$8 sps:$4 sm:$0xff]  }
  0x91   :  { %v456_v20 = vrot.slane %v145_v19, %v3628_v16  ;;  %v2869_v32 = vld [vmem:[#allocation5 + $0xb0] ss:$8 sps:$4 sm:$0xff]   ;;  %v2870_v33 = vld [vmem:[#allocation5 + $0xc4] ss:$8 sps:$4 sm:$0xff]   ;;  %v2872_v34 = vld [vmem:[#allocation5 + $0xc0] ss:$8 sps:$4 sm:$0xff]   ;;  %v3632_v42 = vrot.slane %v449_v39, %v3628_v16 }
  0x92   :  { %2091 = vmatpush1.bf16.msra.mxu0 %v2842_v5  ;;  %v2873_v35 = vld [vmem:[#allocation5 + $0xd4] ss:$8 sps:$4 sm:$0xff]   ;;  %v2875_v36 = vld [vmem:[#allocation5 + $0xd0] ss:$8 sps:$4 sm:$0xff]   ;;  %v2876_v37 = vld [vmem:[#allocation5 + $0xe4] ss:$8 sps:$4 sm:$0xff]  }
  0x93   :  { %2093 = vmatprep.subr.bf16.mxu0 %v2843_v6  ;;  %v464_v23 = vcombine.high %v456_v20, %v456_v20  ;;  %v2878_v38 = vld [vmem:[#allocation5 + $0xe0] ss:$8 sps:$4 sm:$0xff]   ;;  %v2879_v40 = vld [vmem:[#allocation5 + $0xf4] ss:$8 sps:$4 sm:$0xff]   ;;  %v2881_v41 = vld [vmem:[#allocation5 + $0xf0] ss:$8 sps:$4 sm:$0xff]   ;;  %v465_v45 = vcombine.high %v3632_v42, %v3632_v42 }
  0x94   :  { %v2883_v43 = vld [vmem:[#allocation5 + $0x104] ss:$8 sps:$4 sm:$0xff]   ;;  %v2885_v44 = vld [vmem:[#allocation5 + $0x100] ss:$8 sps:$4 sm:$0xff]   ;;  %v2886_v46 = vld [vmem:[#allocation5 + $0x114] ss:$8 sps:$4 sm:$0xff]  }
  0x95   :  { %544 = vmatprep.mubr.f32.mxu0 %v464_v23  ;;  %v1978_v47 = vld [vmem:[#allocation7 + $0x40] sm:$0xff]   ;;  %v2888_v49 = vld [vmem:[#allocation5 + $0x110] ss:$8 sps:$4 sm:$0xff]   ;;  %v1979_v50 = vld [vmem:[#allocation7 + $0x48] sm:$0xff]  }
  0x96   :  { %2095 = vmatpush1.bf16.msra.mxu0 %v2845_v10  ;;  %v1876_v48 = vld [vmem:[#allocation7] sm:$0xff]   ;;  %2273 = vmatprep.subr.bf16.mxu1 %v1978_v47  ;;  %v2892_v53 = vld [vmem:[#allocation5 + $0x134] ss:$8 sps:$4 sm:$0xff]   ;;  %v1971_v54 = vld [vmem:[#allocation7 + $0x8] sm:$0xff]  }
  0x97   :  { %2097 = vmatprep.subr.bf16.mxu0 %v2846_v11  ;;  %v2889_v51 = vld [vmem:[#allocation5 + $0x124] ss:$8 sps:$4 sm:$0xff]   ;;  %v2891_v52 = vld [vmem:[#allocation5 + $0x120] ss:$8 sps:$4 sm:$0xff]   ;;  %2275 = vmatpush3.bf16.msra.mxu1 %v1876_v48  ;;  %v1980_v55 = vld [vmem:[#allocation7 + $0x50] sm:$0xff]  }
  0x98   :  { %2277 = vmatprep.subr.bf16.mxu1 %v1979_v50  ;;  %v1972_v56 = vld [vmem:[#allocation7 + $0x10] sm:$0xff]   ;;  %v1981_v58 = vld [vmem:[#allocation7 + $0x58] sm:$0xff]   ;;  %v2895_v59 = vld [vmem:[#allocation5 + $0x144] ss:$8 sps:$4 sm:$0xff]  }
  0x99   :  { %v2894_v57 = vld [vmem:[#allocation5 + $0x130] ss:$8 sps:$4 sm:$0xff]   ;;  %v2897_v61 = vld [vmem:[#allocation5 + $0x140] ss:$8 sps:$4 sm:$0xff]   ;;  %v2898_v63 = vld [vmem:[#allocation5 + $0x154] ss:$8 sps:$4 sm:$0xff]  }
  0x9a   :  { %2099 = vmatpush1.bf16.msra.mxu0 %v2848_v14  ;;  %v1973_v60 = vld [vmem:[#allocation7 + $0x18] sm:$0xff]   ;;  %v1982_v62 = vld [vmem:[#allocation7 + $0x60] sm:$0xff]   ;;  %v1983_v2 = vld [vmem:[#allocation7 + $0x68] sm:$0xff]  }
  0x9b   :  { %2101 = vmatprep.subr.bf16.mxu0 %v2849_v15  ;;  %2279 = vmatpush3.bf16.msra.mxu1 %v1971_v54  ;;  %v1974_v0 = vld [vmem:[#allocation7 + $0x20] sm:$0xff]   ;;  %v2900_v1 = vld [vmem:[#allocation5 + $0x150] ss:$8 sps:$4 sm:$0xff]   ;;  %v1975_v4 = vld [vmem:[#allocation7 + $0x28] sm:$0xff]  }
  0x9c   :  { %2281 = vmatprep.subr.bf16.mxu1 %v1980_v55  ;;  %v2901_v3 = vld [vmem:[#allocation5 + $0x164] ss:$8 sps:$4 sm:$0xff]   ;;  %v2903_v5 = vld [vmem:[#allocation5 + $0x160] ss:$8 sps:$4 sm:$0xff]   ;;  %v1984_v6 = vld [vmem:[#allocation7 + $0x70] sm:$0xff]  }
  0x9d   :  { %v2904_v7 = vld [vmem:[#allocation5 + $0x174] ss:$8 sps:$4 sm:$0xff]   ;;  %v2906_v8 = vld [vmem:[#allocation5 + $0x170] ss:$8 sps:$4 sm:$0xff]   ;;  %v2907_v9 = vld [vmem:[#allocation5 + $0x184] ss:$8 sps:$4 sm:$0xff]  }
  0x9e   :  { %2103 = vmatpush1.bf16.msra.mxu0 %v2851_v17  ;;  %v2909_v10 = vld [vmem:[#allocation5 + $0x180] ss:$8 sps:$4 sm:$0xff]   ;;  %v2910_v11 = vld [vmem:[#allocation5 + $0x194] ss:$8 sps:$4 sm:$0xff]   ;;  %v2912_v13 = vld [vmem:[#allocation5 + $0x190] ss:$8 sps:$4 sm:$0xff]  }
  0x9f   :  { %2105 = vmatprep.subr.bf16.mxu0 %v2852_v18  ;;  %2283 = vmatpush3.bf16.msra.mxu1 %v1972_v56  ;;  %v2913_v14 = vld [vmem:[#allocation5 + $0x1a4] ss:$8 sps:$4 sm:$0xff]   ;;  %v2915_v15 = vld [vmem:[#allocation5 + $0x1a0] ss:$8 sps:$4 sm:$0xff]   ;;  %v2916_v17 = vld [vmem:[#allocation5 + $0x1b4] ss:$8 sps:$4 sm:$0xff]  }
  0xa0   :  { %2285 = vmatprep.subr.bf16.mxu1 %v1981_v58  ;;  %v2918_v18 = vld [vmem:[#allocation5 + $0x1b0] ss:$8 sps:$4 sm:$0xff]   ;;  %v2919_v19 = vld [vmem:[#allocation5 + $0x1c4] ss:$8 sps:$4 sm:$0xff]   ;;  %v2946_v39 = vld [vmem:[#allocation5 + $0x254] ss:$8 sps:$4 sm:$0xff]  }
  0xa1   :  { %v2925_v23 = vld [vmem:[#allocation5 + $0x1e4] ss:$8 sps:$4 sm:$0xff]   ;;  %v2958_v47 = vld [vmem:[#allocation5 + $0x294] ss:$8 sps:$4 sm:$0xff]   ;;  %v2960_v48 = vld [vmem:[#allocation5 + $0x290] ss:$8 sps:$4 sm:$0xff]  }
  0xa2   :  { %2107 = vmatpush1.bf16.msra.mxu0 %v2854_v21  ;;  %v2922_v21 = vld [vmem:[#allocation5 + $0x1d4] ss:$8 sps:$4 sm:$0xff]   ;;  %v2963_v50 = vld [vmem:[#allocation5 + $0x2a0] ss:$8 sps:$4 sm:$0xff]   ;;  %v2972_v56 = vld [vmem:[#allocation5 + $0x2d0] ss:$8 sps:$4 sm:$0xff]  }
  0xa3   :  { %2109 = vmatprep.subr.bf16.mxu0 %v2855_v22  ;;  %2287 = vmatpush3.bf16.msra.mxu1 %v1973_v60  ;;  %v2924_v22 = vld [vmem:[#allocation5 + $0x1d0] ss:$8 sps:$4 sm:$0xff]   ;;  %v2969_v54 = vld [vmem:[#allocation5 + $0x2c0] ss:$8 sps:$4 sm:$0xff]   ;;  %v2970_v55 = vld [vmem:[#allocation5 + $0x2d4] ss:$8 sps:$4 sm:$0xff]  }
  0xa4   :  { %2289 = vmatprep.subr.bf16.mxu1 %v1982_v62  ;;  %v2975_v58 = vld [vmem:[#allocation5 + $0x2e0] ss:$8 sps:$4 sm:$0xff]   ;;  %v2978_v60 = vld [vmem:[#allocation5 + $0x2f0] ss:$8 sps:$4 sm:$0xff]  }
  0xa5   :  { %v1985_v62 = vld [vmem:[#allocation7 + $0x78] sm:$0xff]  }
  0xa6   :  { %2111 = vmatpush1.bf16.msra.mxu0 %v2857_v24  ;;  %v2927_v24 = vld [vmem:[#allocation5 + $0x1e0] ss:$8 sps:$4 sm:$0xff]  }
  0xa7   :  { %2113 = vmatprep.subr.bf16.mxu0 %v2858_v25  ;;  %2291 = vmatpush3.bf16.msra.mxu1 %v1974_v0  ;;  %v2928_v25 = vld [vmem:[#allocation5 + $0x1f4] ss:$8 sps:$4 sm:$0xff]   ;;  %v2979_v0 = vld [vmem:[#allocation8 + $0x4] ss:$8 sps:$4 sm:$0xff]  }
  0xa8   :  { %2293 = vmatprep.subr.bf16.mxu1 %v1983_v2  ;;  %v435_v2 = vld [vmem:[%s3727_s3] sm:$0x3] }
  0xaa   :  { %2115 = vmatpush1.bf16.msra.mxu0 %v2860_v26  ;;  %v2930_v26 = vld [vmem:[#allocation5 + $0x1f0] ss:$8 sps:$4 sm:$0xff]  }
  0xab   :  { %2117 = vmatprep.subr.bf16.mxu0 %v2861_v27  ;;  %2295 = vmatpush3.bf16.msra.mxu1 %v1975_v4  ;;  %v2931_v27 = vld [vmem:[#allocation5 + $0x204] ss:$8 sps:$4 sm:$0xff]  }
  0xac   :  { %2297 = vmatprep.subr.bf16.mxu1 %v1984_v6 }
  0xae   :  { %2119 = vmatpush1.bf16.msra.mxu0 %v2863_v28  ;;  %v3636_v28 = vld.sshfl [vmem:[#allocation2 + $0x8] sm:$0x33 pattern:$0x76325410] }
  0xaf   :  { %2121 = vmatprep.subr.bf16.mxu0 %v2864_v29  ;;  %v2933_v29 = vld [vmem:[#allocation5 + $0x200] ss:$8 sps:$4 sm:$0xff]  }
  0xb2   :  { %2123 = vmatpush1.bf16.msra.mxu0 %v2866_v30  ;;  %v473_v30 = vcombine.high %v3636_v28, %v3636_v28 }
  0xb3   :  { %2125 = vmatprep.subr.bf16.mxu0 %v2867_v31  ;;  %v2934_v31 = vld [vmem:[#allocation5 + $0x214] ss:$8 sps:$4 sm:$0xff]  }
  0xb6   :  { %2127 = vmatpush1.bf16.msra.mxu0 %v2869_v32  ;;  %v2936_v32 = vld [vmem:[#allocation5 + $0x210] ss:$8 sps:$4 sm:$0xff]  }
  0xb7   :  { %2129 = vmatprep.subr.bf16.mxu0 %v2870_v33  ;;  %v2937_v33 = vld [vmem:[#allocation5 + $0x224] ss:$8 sps:$4 sm:$0xff]  }
  0xba   :  { %2131 = vmatpush1.bf16.msra.mxu0 %v2872_v34  ;;  %v2939_v34 = vld [vmem:[#allocation5 + $0x220] ss:$8 sps:$4 sm:$0xff]  }
  0xbb   :  { %2133 = vmatprep.subr.bf16.mxu0 %v2873_v35  ;;  %v2940_v35 = vld [vmem:[#allocation5 + $0x234] ss:$8 sps:$4 sm:$0xff]  }
  0xbe   :  { %2135 = vmatpush1.bf16.msra.mxu0 %v2875_v36  ;;  %v2942_v36 = vld [vmem:[#allocation5 + $0x230] ss:$8 sps:$4 sm:$0xff]  }
  0xbf   :  { %2137 = vmatprep.subr.bf16.mxu0 %v2876_v37  ;;  %v2943_v37 = vld [vmem:[#allocation5 + $0x244] ss:$8 sps:$4 sm:$0xff]  }
  0xc2   :  { %2139 = vmatpush1.bf16.msra.mxu0 %v2878_v38  ;;  %v2945_v38 = vld [vmem:[#allocation5 + $0x240] ss:$8 sps:$4 sm:$0xff]  }
  0xc3   :  { %2141 = vmatprep.subr.bf16.mxu0 %v2879_v40  ;;  %v2948_v40 = vld [vmem:[#allocation5 + $0x250] ss:$8 sps:$4 sm:$0xff]  }
  0xc6   :  { %2143 = vmatpush1.bf16.msra.mxu0 %v2881_v41  ;;  %v2949_v41 = vld [vmem:[#allocation5 + $0x264] ss:$8 sps:$4 sm:$0xff]  }
  0xc7   :  { %2145 = vmatprep.subr.bf16.mxu0 %v2883_v43  ;;  %v2952_v43 = vld [vmem:[#allocation5 + $0x274] ss:$8 sps:$4 sm:$0xff]  }
  0xc9   :  { %545 = vmatmul.mubr.f32.vlgmr.msra.gmra.mrb[0].mxu0 %v456_v20  ;;  %v2921_v20 = vld [vmem:[#allocation5 + $0x1c0] ss:$8 sps:$4 sm:$0xff]  }
  0xca   :  { %2147 = vmatpush1.bf16.msra.mxu0 %v2885_v44  ;;  %615 = vmatprep.mubr.f32.mxu0 %v465_v45  ;;  %v2954_v44 = vld [vmem:[#allocation5 + $0x270] ss:$8 sps:$4 sm:$0xff]   ;;  %v2955_v45 = vld [vmem:[#allocation5 + $0x284] ss:$8 sps:$4 sm:$0xff]  }
  0xcb   :  { %2149 = vmatprep.subr.bf16.mxu0 %v2886_v46  ;;  %v2957_v46 = vld [vmem:[#allocation5 + $0x280] ss:$8 sps:$4 sm:$0xff]  }
  0xce   :  { %2151 = vmatpush1.bf16.msra.mxu0 %v2888_v49  ;;  %v2961_v49 = vld [vmem:[#allocation5 + $0x2a4] ss:$8 sps:$4 sm:$0xff]  }
  0xcf   :  { %2153 = vmatprep.subr.bf16.mxu0 %v2889_v51  ;;  %v2964_v51 = vld [vmem:[#allocation5 + $0x2b4] ss:$8 sps:$4 sm:$0xff]  }
  0xd2   :  { %2155 = vmatpush1.bf16.msra.mxu0 %v2891_v52  ;;  %v2966_v52 = vld [vmem:[#allocation5 + $0x2b0] ss:$8 sps:$4 sm:$0xff]  }
  0xd3   :  { %2157 = vmatprep.subr.bf16.mxu0 %v2892_v53  ;;  %v2967_v53 = vld [vmem:[#allocation5 + $0x2c4] ss:$8 sps:$4 sm:$0xff]  }
  0xd6   :  { %2159 = vmatpush1.bf16.msra.mxu0 %v2894_v57  ;;  %v2973_v57 = vld [vmem:[#allocation5 + $0x2e4] ss:$8 sps:$4 sm:$0xff]  }
  0xd7   :  { %2161 = vmatprep.subr.bf16.mxu0 %v2895_v59  ;;  %v2976_v59 = vld [vmem:[#allocation5 + $0x2f4] ss:$8 sps:$4 sm:$0xff]  }
  0xda   :  { %2163 = vmatpush1.bf16.msra.mxu0 %v2897_v61  ;;  %v1976_v61 = vld [vmem:[#allocation7 + $0x30] sm:$0xff]  }
  0xdb   :  { %2165 = vmatprep.subr.bf16.mxu0 %v2898_v63  ;;  %2299 = vmatpush3.bf16.msra.mxu1 %v1976_v61  ;;  %v1977_v63 = vld [vmem:[#allocation7 + $0x38] sm:$0xff]  }
  0xdc   :  { %2301 = vmatprep.subr.bf16.mxu1 %v1985_v62  ;;  %v3012_v61 = vld [vmem:[#allocation11 + $0x34] ss:$8 sps:$4 sm:$0xff]   ;;  %v3014_v62 = vld [vmem:[#allocation11 + $0x30] ss:$8 sps:$4 sm:$0xff]  }
  0xde   :  { %2167 = vmatpush1.bf16.msra.mxu0 %v2900_v1  ;;  %v3643_v1 = vsub.s32 0, %v3625_v12 }
  0xdf   :  { %2169 = vmatprep.subr.bf16.mxu0 %v2901_v3  ;;  %2303 = vmatpush3.bf16.msra.mxu1 %v1977_v63  ;;  %v3649_v3 = vsub.s32 1, %v3625_v12  ;;  %v3015_v63 = vld [vmem:[#allocation11 + $0x44] ss:$8 sps:$4 sm:$0xff]  }
  0xe0   :  { %2305 = vmatprep.subr.bf16.mxu1 %v2979_v0  ;;  %v440_v4 = vrot.slane %v435_v2, %v3643_v1  ;;  %v3017_v0 = vld [vmem:[#allocation11 + $0x40] ss:$8 sps:$4 sm:$0xff]  }
  0xe2   :  { %2171 = vmatpush1.bf16.msra.mxu0 %v2903_v5  ;;  %v444_v5 = vrot.slane %v435_v2, %v3649_v3  ;;  %v3018_v2 = vld [vmem:[#allocation11 + $0x54] ss:$8 sps:$4 sm:$0xff]  }
  0xe3   :  { %2173 = vmatprep.subr.bf16.mxu0 %v2904_v7 }
  0xe6   :  { %2175 = vmatpush1.bf16.msra.mxu0 %v2906_v8 }
  0xe7   :  { %2177 = vmatprep.subr.bf16.mxu0 %v2907_v9 }
  0xea   :  { %2179 = vmatpush1.bf16.msra.mxu0 %v2909_v10 }
  0xeb   :  { %2181 = vmatprep.subr.bf16.mxu0 %v2910_v11  ;;  %v2981_v11 = vld [vmem:[#allocation8] ss:$8 sps:$4 sm:$0xff]  }
  0xee   :  { %2183 = vmatpush1.bf16.msra.mxu0 %v2912_v13 }
  0xef   :  { %2185 = vmatprep.subr.bf16.mxu0 %v2913_v14  ;;  %v2982_v14 = vld [vmem:[#allocation8 + $0x14] ss:$8 sps:$4 sm:$0xff]  }
  0xf2   :  { %2187 = vmatpush1.bf16.msra.mxu0 %v2915_v15  ;;  %v2984_v15 = vld [vmem:[#allocation8 + $0x10] ss:$8 sps:$4 sm:$0xff]  }
  0xf3   :  { %2189 = vmatprep.subr.bf16.mxu0 %v2916_v17  ;;  %v2985_v17 = vld [vmem:[#allocation8 + $0x24] ss:$8 sps:$4 sm:$0xff]  }
  0xf6   :  { %2191 = vmatpush1.bf16.msra.mxu0 %v2918_v18  ;;  %v2987_v18 = vld [vmem:[#allocation8 + $0x20] ss:$8 sps:$4 sm:$0xff]  }
  0xf7   :  { %2193 = vmatprep.subr.bf16.mxu0 %v2919_v19  ;;  %v2988_v19 = vld [vmem:[#allocation8 + $0x34] ss:$8 sps:$4 sm:$0xff]  }
  0xfa   :  { %2195 = vmatpush1.bf16.msra.mxu0 %v2921_v20  ;;  %v2990_v20 = vld [vmem:[#allocation8 + $0x30] ss:$8 sps:$4 sm:$0xff]  }
  0xfb   :  { %2197 = vmatprep.subr.bf16.mxu0 %v2922_v21  ;;  %v2991_v21 = vld [vmem:[#allocation8 + $0x44] ss:$8 sps:$4 sm:$0xff]  }
  0xfe   :  { %2199 = vmatpush1.bf16.msra.mxu0 %v2924_v22  ;;  %v2993_v22 = vld [vmem:[#allocation8 + $0x40] ss:$8 sps:$4 sm:$0xff]  }
  0xff   :  { %2201 = vmatprep.subr.bf16.mxu0 %v2925_v23  ;;  %v2994_v23 = vld [vmem:[#allocation8 + $0x54] ss:$8 sps:$4 sm:$0xff]  }
 0x102   :  { %2203 = vmatpush1.bf16.msra.mxu0 %v2927_v24  ;;  %v2996_v24 = vld [vmem:[#allocation8 + $0x50] ss:$8 sps:$4 sm:$0xff]  }
 0x103   :  { %2205 = vmatprep.subr.bf16.mxu0 %v2928_v25  ;;  %v2997_v25 = vld [vmem:[#allocation8 + $0x64] ss:$8 sps:$4 sm:$0xff]  }
 0x106   :  { %2207 = vmatpush1.bf16.msra.mxu0 %v2930_v26  ;;  %v2999_v26 = vld [vmem:[#allocation8 + $0x60] ss:$8 sps:$4 sm:$0xff]  }
 0x107   :  { %2209 = vmatprep.subr.bf16.mxu0 %v2931_v27  ;;  %v3000_v27 = vld [vmem:[#allocation8 + $0x74] ss:$8 sps:$4 sm:$0xff]  }
 0x109   :  { %616 = vmatmul.mubr.f32.vlgmr.msra.gmra.mrb[0].mxu0 %v3632_v42  ;;  %v2951_v42 = vld [vmem:[#allocation5 + $0x260] ss:$8 sps:$4 sm:$0xff]  }
 0x10a   :  { %2211 = vmatpush1.bf16.msra.mxu0 %v2933_v29  ;;  %686 = vmatprep.mubr.f32.mxu0 %v473_v30  ;;  %v3441_v29 = vmov 0.0   ;;  %v3442_v30 = vmov 0.0|0.0  }
 0x10b   :  { %2213 = vmatprep.subr.bf16.mxu0 %v2934_v31 }
 0x10e   :  { %2215 = vmatpush1.bf16.msra.mxu0 %v2936_v32  ;;  %v1866_v32 = vld [vmem:[%s3729_s5] ss:$0 sm:$0xff] }
 0x10f   :  { %2217 = vmatprep.subr.bf16.mxu0 %v2937_v33 }
 0x112   :  { %2219 = vmatpush1.bf16.msra.mxu0 %v2939_v34 }
 0x113   :  { %2221 = vmatprep.subr.bf16.mxu0 %v2940_v35 }
 0x116   :  { %2223 = vmatpush1.bf16.msra.mxu0 %v2942_v36 }
 0x117   :  { %2225 = vmatprep.subr.bf16.mxu0 %v2943_v37  ;;  %v1940_v37 = vld [vmem:[#allocation10] sm:$0xff]  }
 0x11a   :  { %2227 = vmatpush1.bf16.msra.mxu0 %v2945_v38  ;;  %v1986_v38 = vld [vmem:[#allocation10 + $0x8] sm:$0xff]  }
 0x11b   :  { %2229 = vmatprep.subr.bf16.mxu0 %v2946_v39  ;;  %v1987_v39 = vld [vmem:[#allocation10 + $0x10] sm:$0xff]  }
 0x11e   :  { %2231 = vmatpush1.bf16.msra.mxu0 %v2948_v40  ;;  %v1988_v40 = vld [vmem:[#allocation10 + $0x18] sm:$0xff]  }
 0x11f   :  { %2233 = vmatprep.subr.bf16.mxu0 %v2949_v41  ;;  %v1989_v41 = vld [vmem:[#allocation10 + $0x20] sm:$0xff]  }
 0x122   :  { %2235 = vmatpush1.bf16.msra.mxu0 %v2951_v42  ;;  %v1990_v42 = vld [vmem:[#allocation10 + $0x28] sm:$0xff]  }
 0x123   :  { %2237 = vmatprep.subr.bf16.mxu0 %v2952_v43  ;;  %v1991_v43 = vld [vmem:[#allocation10 + $0x30] sm:$0xff]  }
 0x126   :  { %2239 = vmatpush1.bf16.msra.mxu0 %v2954_v44  ;;  %v1992_v44 = vld [vmem:[#allocation10 + $0x38] sm:$0xff]  }
 0x127   :  { %2241 = vmatprep.subr.bf16.mxu0 %v2955_v45  ;;  %v3003_v45 = vld [vmem:[#allocation11 + $0x4] ss:$8 sps:$4 sm:$0xff]  }
 0x12a   :  { %2243 = vmatpush1.bf16.msra.mxu0 %v2957_v46  ;;  %v885_v46 = vld [vmem:[%s3731_s7] sm:$0x3] }
 0x12b   :  { %2245 = vmatprep.subr.bf16.mxu0 %v2958_v47  ;;  %v890_v47 = vrot.slane %v885_v46, %v3643_v1 }
 0x12e   :  { %2247 = vmatpush1.bf16.msra.mxu0 %v2960_v48  ;;  %v894_v48 = vrot.slane %v885_v46, %v3649_v3  ;;  %v3029_v46 = vld [vmem:[#allocation13] ss:$24 sps:$4 sm:$0xff]  }
 0x12f   :  { %2249 = vmatprep.subr.bf16.mxu0 %v2961_v49 }
 0x132   :  { %2251 = vmatpush1.bf16.msra.mxu0 %v2963_v50 }
 0x133   :  { %2253 = vmatprep.subr.bf16.mxu0 %v2964_v51 }
 0x136   :  { %2255 = vmatpush1.bf16.msra.mxu0 %v2966_v52  ;;  %v968_v52 = vld [vmem:[%s3725_s1] sm:$0x3] }
 0x137   :  { %2257 = vmatprep.subr.bf16.mxu0 %v2967_v53 }
 0x13a   :  { %2259 = vmatpush1.bf16.msra.mxu0 %v2969_v54 }
 0x13b   :  { %2261 = vmatprep.subr.bf16.mxu0 %v2970_v55  ;;  %v3005_v55 = vld [vmem:[#allocation11] ss:$8 sps:$4 sm:$0xff]  }
 0x13e   :  { %2263 = vmatpush1.bf16.msra.mxu0 %v2972_v56 }
 0x13f   :  { %2265 = vmatprep.subr.bf16.mxu0 %v2973_v57  ;;  %v3006_v57 = vld [vmem:[#allocation11 + $0x14] ss:$8 sps:$4 sm:$0xff]  }
 0x142   :  { %2267 = vmatpush1.bf16.msra.mxu0 %v2975_v58  ;;  %v3008_v58 = vld [vmem:[#allocation11 + $0x10] ss:$8 sps:$4 sm:$0xff]  }
 0x143   :  { %2269 = vmatprep.subr.bf16.mxu0 %v2976_v59  ;;  %v3009_v59 = vld [vmem:[#allocation11 + $0x24] ss:$8 sps:$4 sm:$0xff]  }
 0x146   :  { %2271 = vmatpush1.bf16.msra.mxu0 %v2978_v60  ;;  %v3011_v60 = vld [vmem:[#allocation11 + $0x20] ss:$8 sps:$4 sm:$0xff]  }
 0x149   :  { %687 = vmatmul.mubr.f32.vlgmr.msra.gmra.mrb[0].mxu0 %v3636_v28  ;;  %v3002_v28 = vld [vmem:[#allocation8 + $0x70] ss:$8 sps:$4 sm:$0xff]  }
 0x21c   :  { %v688_v6 = vpop.f32.mrb[0].mxu0 }
 0x21d   :  { %v2584_v7 = vadd.f32 %v688_v6, %v440_v4  ;;  %v690_v8 = vpop.f32.mrb[1].mxu0  ;;  %v3020_v4 = vld [vmem:[#allocation11 + $0x50] ss:$8 sps:$4 sm:$0xff]   ;;  %v3023_v6 = vld [vmem:[#allocation11 + $0x60] ss:$8 sps:$4 sm:$0xff]  }
 0x21e   :  { %v2585_v9 = vadd.f32 %v690_v8, %v444_v5  ;;  %v3021_v5 = vld [vmem:[#allocation11 + $0x64] ss:$8 sps:$4 sm:$0xff]   ;;  %v3026_v8 = vld [vmem:[#allocation11 + $0x70] ss:$8 sps:$4 sm:$0xff]  }
 0x21f   :  { %v693_v13 = vmax.f32 %v2584_v7, 0.0  ;;  %v3024_v7 = vld [vmem:[#allocation11 + $0x74] ss:$8 sps:$4 sm:$0xff]  }
 0x220   :  { %v694_v10 = vmax.f32 %v2585_v9, 0.0  ;;  %v3027_v9 = vld [vmem:[#allocation13 + $0x4] ss:$24 sps:$4 sm:$0xff]  }
 0x222   :  { %830 = vmatprep.mubr.f32.mxu1 %v694_v10  ;;  %v3030_v10 = vld [vmem:[#allocation13 + $0xc] ss:$24 sps:$4 sm:$0xff]  }
 0x223   :  { %831 = vmatmul.mubr.f32.vlgmr.msra.gmra.mrb[0].mxu1 %v693_v13  ;;  %2457 = vmatprep.subr.bf16.mxu0 %v3030_v10  ;;  %v3036_v13 = vld [vmem:[#allocation13 + $0x3c] ss:$24 sps:$4 sm:$0xff]  }
 0x224   :  { %2307 = vmatpush1.bf16.msra.mxu1 %v2981_v11  ;;  %961 = vmatprep.mubr.f32.mxu1 %v3441_v29  ;;  %v3032_v11 = vld [vmem:[#allocation13 + $0x8] ss:$24 sps:$4 sm:$0xff]   ;;  %v3105_v10 = vld [vmem:[#allocation13 + $0x274] ss:$24 sps:$4 sm:$0xff]  }
 0x225   :  { %2309 = vmatprep.subr.bf16.mxu1 %v2982_v14  ;;  %2459 = vmatpush1.bf16.msra.mxu0 %v3032_v11  ;;  %v3038_v14 = vld [vmem:[#allocation13 + $0x38] ss:$24 sps:$4 sm:$0xff]  }
 0x226   :  { %2461 = vmatprep.subr.bf16.mxu0 %v3036_v13  ;;  %v3107_v11 = vld [vmem:[#allocation13 + $0x270] ss:$24 sps:$4 sm:$0xff]   ;;  %v3111_v13 = vld [vmem:[#allocation13 + $0x2a4] ss:$24 sps:$4 sm:$0xff]  }
 0x228   :  { %2311 = vmatpush1.bf16.msra.mxu1 %v2984_v15  ;;  %v3042_v15 = vld [vmem:[#allocation13 + $0x6c] ss:$24 sps:$4 sm:$0xff]  }
 0x229   :  { %2313 = vmatprep.subr.bf16.mxu1 %v2985_v17  ;;  %2463 = vmatpush1.bf16.msra.mxu0 %v3038_v14  ;;  %v3044_v17 = vld [vmem:[#allocation13 + $0x68] ss:$24 sps:$4 sm:$0xff]  }
 0x22a   :  { %2465 = vmatprep.subr.bf16.mxu0 %v3042_v15  ;;  %v3113_v14 = vld [vmem:[#allocation13 + $0x2a0] ss:$24 sps:$4 sm:$0xff]   ;;  %v3117_v15 = vld [vmem:[#allocation13 + $0x2d4] ss:$24 sps:$4 sm:$0xff]  }
 0x22c   :  { %2315 = vmatpush1.bf16.msra.mxu1 %v2987_v18  ;;  %v3048_v18 = vld [vmem:[#allocation13 + $0x9c] ss:$24 sps:$4 sm:$0xff]  }
 0x22d   :  { %2317 = vmatprep.subr.bf16.mxu1 %v2988_v19  ;;  %2467 = vmatpush1.bf16.msra.mxu0 %v3044_v17  ;;  %v3050_v19 = vld [vmem:[#allocation13 + $0x98] ss:$24 sps:$4 sm:$0xff]  }
 0x22e   :  { %2469 = vmatprep.subr.bf16.mxu0 %v3048_v18  ;;  %v3119_v17 = vld [vmem:[#allocation13 + $0x2d0] ss:$24 sps:$4 sm:$0xff]   ;;  %v3120_v18 = vld [vmem:[#allocation13 + $0x2dc] ss:$24 sps:$4 sm:$0xff]  }
 0x230   :  { %2319 = vmatpush1.bf16.msra.mxu1 %v2990_v20  ;;  %v3054_v20 = vld [vmem:[#allocation13 + $0xcc] ss:$24 sps:$4 sm:$0xff]  }
 0x231   :  { %2321 = vmatprep.subr.bf16.mxu1 %v2991_v21  ;;  %2471 = vmatpush1.bf16.msra.mxu0 %v3050_v19  ;;  %v3056_v21 = vld [vmem:[#allocation13 + $0xc8] ss:$24 sps:$4 sm:$0xff]   ;;  %v3122_v19 = vld [vmem:[#allocation13 + $0x2d8] ss:$24 sps:$4 sm:$0xff]  }
 0x232   :  { %2473 = vmatprep.subr.bf16.mxu0 %v3054_v20  ;;  %v3123_v20 = vld [vmem:[#allocation13 + $0x14] ss:$24 sps:$4 sm:$0xff]  }
 0x234   :  { %2323 = vmatpush1.bf16.msra.mxu1 %v2993_v22  ;;  %v3060_v22 = vld [vmem:[#allocation13 + $0xfc] ss:$24 sps:$4 sm:$0xff]  }
 0x235   :  { %2325 = vmatprep.subr.bf16.mxu1 %v2994_v23  ;;  %2475 = vmatpush1.bf16.msra.mxu0 %v3056_v21  ;;  %v3062_v23 = vld [vmem:[#allocation13 + $0xf8] ss:$24 sps:$4 sm:$0xff]   ;;  %v1129_v21 = vld [vmem:[%s3735_s11] sm:$0x3]  ;;  %s3444_s11 = smov [#allocation15]  }
 0x236   :  { %2477 = vmatprep.subr.bf16.mxu0 %v3060_v22  ;;  %v1134_v22 = vrot.slane %v1129_v21, %v3643_v1  ;;  %s1836_s4 = sshll.u32 %s3444_s11, 4  ;;  %s1837_s4 = int_to_ptr.vmem [resolvable:$true] %s1836_s4 }
 0x237   :  { %s3349_s22 = scalar_lea.vmem %s1837_s4, 32  ;;  %p3354_p1 = scmp.lt.s32.totalorder %s1837_s4, %s1837_s4 }
 0x238   :  { %2327 = vmatpush1.bf16.msra.mxu1 %v2996_v24  ;;  %v3066_v24 = vld [vmem:[#allocation13 + $0x12c] ss:$24 sps:$4 sm:$0xff]   ;;  %p3350_p0 = scmp.ne.s32.totalorder %s1837_s4, %s3349_s22  ;;  %p3355_p2 = scmp.lt.s32.totalorder %s3349_s22, %s3349_s22 }
 0x239   :  { %2329 = vmatprep.subr.bf16.mxu1 %v2997_v25  ;;  %2479 = vmatpush1.bf16.msra.mxu0 %v3062_v23  ;;  %v3068_v25 = vld [vmem:[#allocation13 + $0x128] ss:$24 sps:$4 sm:$0xff]   ;;  %v1138_v23 = vrot.slane %v1129_v21, %v3649_v3 }
 0x23a   :  { %2481 = vmatprep.subr.bf16.mxu0 %v3066_v24  ;;  %p3356_p3 = por %p3355_p2, %p3354_p1 }
 0x23c   :  { %2331 = vmatpush1.bf16.msra.mxu1 %v2999_v26  ;;  %v3072_v26 = vld [vmem:[#allocation13 + $0x15c] ss:$24 sps:$4 sm:$0xff]   ;;  %p3357_p4 = pnand %p3356_p3, %p3350_p0 }
 0x23d   :  { %2333 = vmatprep.subr.bf16.mxu1 %v3000_v27  ;;  %2483 = vmatpush1.bf16.msra.mxu0 %v3068_v25  ;;  %v3074_v27 = vld [vmem:[#allocation13 + $0x158] ss:$24 sps:$4 sm:$0xff]  }
 0x23e   :  { %2485 = vmatprep.subr.bf16.mxu0 %v3072_v26 }
 0x240   :  { %2335 = vmatpush1.bf16.msra.mxu1 %v3002_v28  ;;  %v3078_v28 = vld [vmem:[#allocation13 + $0x18c] ss:$24 sps:$4 sm:$0xff]  }
 0x241   :  { %2336 = vmatprep.subr.bf16.mxu1 %v3442_v30  ;;  %2487 = vmatpush1.bf16.msra.mxu0 %v3074_v27 }
 0x242   :  { %2489 = vmatprep.subr.bf16.mxu0 %v3078_v28 }
 0x2f6   :  { %v2025_v31 = vpop.f32.mrb[0].mxu1 }
 0x2f7   :  { %v2026_v33 = vpop.f32.mrb[1].mxu1 }
 0x2f8   :  { %v2027_v34 = vadd.f32 %v2026_v33, %v2025_v31  ;;  %v3086_v31 = vld [vmem:[#allocation13 + $0x1b8] ss:$24 sps:$4 sm:$0xff]   ;;  %v3092_v33 = vld [vmem:[#allocation13 + $0x1e8] ss:$24 sps:$4 sm:$0xff]  }
 0x2fa   :  { %v833_v35 = vadd.f32 %v2027_v34, %v1866_v32  ;;  %v3090_v32 = vld [vmem:[#allocation13 + $0x1ec] ss:$24 sps:$4 sm:$0xff]   ;;  %v3096_v34 = vld [vmem:[#allocation13 + $0x21c] ss:$24 sps:$4 sm:$0xff]  }
 0x2fc   :  { %v836_v36 = vmax.f32 %v833_v35, 0.0  ;;  %v3098_v35 = vld [vmem:[#allocation13 + $0x218] ss:$24 sps:$4 sm:$0xff]  }
 0x2fe   :  { %962 = vmatmul.mubr.f32.vlgmr.msra.gmra.mrb[2].mxu1 %v836_v36  ;;  %v3102_v36 = vld [vmem:[#allocation13 + $0x24c] ss:$24 sps:$4 sm:$0xff]  }
 0x2ff   :  { %2338 = vmatpush3.bf16.msra.mxu1 %v1940_v37  ;;  %2077 = vmatprep.mubr.msk.f32.mxu1 %vm3443_vm0, %v3441_v29  ;;  %v3104_v37 = vld [vmem:[#allocation13 + $0x248] ss:$24 sps:$4 sm:$0xff]  }
 0x300   :  { %2339 = vmatprep.subr.bf16.mxu1 %v3442_v30 }
 0x303   :  { %2341 = vmatpush3.bf16.msra.mxu1 %v1986_v38  ;;  %v3108_v38 = vld [vmem:[#allocation13 + $0x27c] ss:$24 sps:$4 sm:$0xff]  }
 0x304   :  { %2342 = vmatprep.subr.bf16.mxu1 %v3442_v30 }
 0x307   :  { %2344 = vmatpush3.bf16.msra.mxu1 %v1987_v39  ;;  %v3110_v39 = vld [vmem:[#allocation13 + $0x278] ss:$24 sps:$4 sm:$0xff]  }
 0x308   :  { %2345 = vmatprep.subr.bf16.mxu1 %v3442_v30 }
 0x30b   :  { %2347 = vmatpush3.bf16.msra.mxu1 %v1988_v40  ;;  %v3114_v40 = vld [vmem:[#allocation13 + $0x2ac] ss:$24 sps:$4 sm:$0xff]  }
 0x30c   :  { %2348 = vmatprep.subr.bf16.mxu1 %v3442_v30 }
 0x30f   :  { %2350 = vmatpush3.bf16.msra.mxu1 %v1989_v41  ;;  %v3116_v41 = vld [vmem:[#allocation13 + $0x2a8] ss:$24 sps:$4 sm:$0xff]  }
 0x310   :  { %2351 = vmatprep.subr.bf16.mxu1 %v3442_v30 }
 0x313   :  { %2353 = vmatpush3.bf16.msra.mxu1 %v1990_v42  ;;  %v1867_v42 = vld [vmem:[%s3733_s9] ss:$0 sm:$0xff] }
 0x314   :  { %2354 = vmatprep.subr.bf16.mxu1 %v3442_v30 }
 0x317   :  { %2356 = vmatpush3.bf16.msra.mxu1 %v1991_v43 }
 0x318   :  { %2357 = vmatprep.subr.bf16.mxu1 %v3442_v30  ;;  %v3084_v30 = vld [vmem:[#allocation13 + $0x1bc] ss:$24 sps:$4 sm:$0xff]  }
 0x31b   :  { %2359 = vmatpush3.bf16.msra.mxu1 %v1992_v44 }
 0x31c   :  { %2361 = vmatprep.subr.bf16.mxu1 %v3003_v45 }
 0x3d1   :  { %v963_v49 = vpop.f32.mrb[2].mxu1 }
 0x3d2   :  { %v964_v50 = vadd.f32 %v963_v49, %v890_v47  ;;  %v965_v51 = vpop.f32.mrb[3].mxu1  ;;  %v3035_v49 = vld [vmem:[#allocation13 + $0x30] ss:$24 sps:$4 sm:$0xff]  }
 0x3d3   :  { %v966_v53 = vadd.f32 %v965_v51, %v894_v48  ;;  %v3033_v48 = vld [vmem:[#allocation13 + $0x34] ss:$24 sps:$4 sm:$0xff]   ;;  %v3041_v51 = vld [vmem:[#allocation13 + $0x60] ss:$24 sps:$4 sm:$0xff]  }
 0x3d4   :  { %1818 = vst [vmem:[#allocation15] sm:$0x3] %v964_v50 }
 0x3d5   :  { %v969_v54 = vmul.f32 %v968_v52, %v966_v53  ;;  %1819 = vst [vmem:[#allocation17] sm:$0x3] %v966_v53  ;;  %v3045_v52 = vld [vmem:[#allocation13 + $0x94] ss:$24 sps:$4 sm:$0xff]   ;;  %v3047_v53 = vld [vmem:[#allocation13 + $0x90] ss:$24 sps:$4 sm:$0xff]  }
 0x3d7   :  { %v970_v56 = vadd.f32 %v969_v54, %v964_v50  ;;  %v3039_v50 = vld [vmem:[#allocation13 + $0x64] ss:$24 sps:$4 sm:$0xff]  }
 0x3d8   :  { %v3051_v54 = vld [vmem:[#allocation13 + $0xc4] ss:$24 sps:$4 sm:$0xff]  }
 0x3d9   :  { %2078 = vmatmul.mubr.f32.vlgmr.msra.gmra.mrb[4].mxu1 %v970_v56  ;;  %v3057_v56 = vld [vmem:[#allocation13 + $0xf4] ss:$24 sps:$4 sm:$0xff]  }
 0x3da   :  { %2363 = vmatpush1.bf16.msra.mxu1 %v3005_v55  ;;  %1205 = vmatprep.mubr.f32.mxu1 %v3441_v29  ;;  %v3080_v29 = vld [vmem:[#allocation13 + $0x188] ss:$24 sps:$4 sm:$0xff]  }
 0x3db   :  { %2365 = vmatprep.subr.bf16.mxu1 %v3006_v57  ;;  %2491 = vmatpush1.bf16.msra.mxu0 %v3080_v29  ;;  %v3053_v55 = vld [vmem:[#allocation13 + $0xc0] ss:$24 sps:$4 sm:$0xff]   ;;  %v3059_v57 = vld [vmem:[#allocation13 + $0xf0] ss:$24 sps:$4 sm:$0xff]  }
 0x3dc   :  { %2493 = vmatprep.subr.bf16.mxu0 %v3084_v30  ;;  %v3125_v29 = vld [vmem:[#allocation13 + $0x10] ss:$24 sps:$4 sm:$0xff]  }
 0x3de   :  { %2367 = vmatpush1.bf16.msra.mxu1 %v3008_v58  ;;  %v3063_v58 = vld [vmem:[#allocation13 + $0x124] ss:$24 sps:$4 sm:$0xff]  }
 0x3df   :  { %2369 = vmatprep.subr.bf16.mxu1 %v3009_v59  ;;  %2495 = vmatpush1.bf16.msra.mxu0 %v3086_v31  ;;  %v3065_v59 = vld [vmem:[#allocation13 + $0x120] ss:$24 sps:$4 sm:$0xff]   ;;  %v3126_v31 = vld [vmem:[#allocation13 + $0x44] ss:$24 sps:$4 sm:$0xff]  }
 0x3e0   :  { %2497 = vmatprep.subr.bf16.mxu0 %v3090_v32  ;;  %v3128_v32 = vld [vmem:[#allocation13 + $0x40] ss:$24 sps:$4 sm:$0xff]  }
 0x3e2   :  { %2371 = vmatpush1.bf16.msra.mxu1 %v3011_v60  ;;  %v3069_v60 = vld [vmem:[#allocation13 + $0x154] ss:$24 sps:$4 sm:$0xff]  }
 0x3e3   :  { %2373 = vmatprep.subr.bf16.mxu1 %v3012_v61  ;;  %2499 = vmatpush1.bf16.msra.mxu0 %v3092_v33  ;;  %v3071_v61 = vld [vmem:[#allocation13 + $0x150] ss:$24 sps:$4 sm:$0xff]   ;;  %v3129_v33 = vld [vmem:[#allocation13 + $0x74] ss:$24 sps:$4 sm:$0xff]  }
 0x3e4   :  { %2501 = vmatprep.subr.bf16.mxu0 %v3096_v34  ;;  %v3131_v34 = vld [vmem:[#allocation13 + $0x70] ss:$24 sps:$4 sm:$0xff]  }
 0x3e6   :  { %2375 = vmatpush1.bf16.msra.mxu1 %v3014_v62  ;;  %v3075_v62 = vld [vmem:[#allocation13 + $0x184] ss:$24 sps:$4 sm:$0xff]  }
 0x3e7   :  { %2377 = vmatprep.subr.bf16.mxu1 %v3015_v63  ;;  %2503 = vmatpush1.bf16.msra.mxu0 %v3098_v35  ;;  %v3077_v63 = vld [vmem:[#allocation13 + $0x180] ss:$24 sps:$4 sm:$0xff]   ;;  %v3132_v35 = vld [vmem:[#allocation13 + $0xa4] ss:$24 sps:$4 sm:$0xff]  }
 0x3e8   :  { %2505 = vmatprep.subr.bf16.mxu0 %v3102_v36  ;;  %v3134_v36 = vld [vmem:[#allocation13 + $0xa0] ss:$24 sps:$4 sm:$0xff]  }
 0x3ea   :  { %2379 = vmatpush1.bf16.msra.mxu1 %v3017_v0  ;;  %v3081_v0 = vld [vmem:[#allocation13 + $0x1b4] ss:$24 sps:$4 sm:$0xff]  }
 0x3eb   :  { %2381 = vmatprep.subr.bf16.mxu1 %v3018_v2  ;;  %2507 = vmatpush1.bf16.msra.mxu0 %v3104_v37  ;;  %v3083_v2 = vld [vmem:[#allocation13 + $0x1b0] ss:$24 sps:$4 sm:$0xff]   ;;  %v3135_v37 = vld [vmem:[#allocation13 + $0xd4] ss:$24 sps:$4 sm:$0xff]  }
 0x3ec   :  { %2509 = vmatprep.subr.bf16.mxu0 %v3108_v38  ;;  %v3137_v38 = vld [vmem:[#allocation13 + $0xd0] ss:$24 sps:$4 sm:$0xff]  }
 0x3ee   :  { %2383 = vmatpush1.bf16.msra.mxu1 %v3020_v4  ;;  %v3087_v4 = vld [vmem:[#allocation13 + $0x1e4] ss:$24 sps:$4 sm:$0xff]  }
 0x3ef   :  { %2385 = vmatprep.subr.bf16.mxu1 %v3021_v5  ;;  %2511 = vmatpush1.bf16.msra.mxu0 %v3110_v39  ;;  %v3089_v5 = vld [vmem:[#allocation13 + $0x1e0] ss:$24 sps:$4 sm:$0xff]   ;;  %v3138_v39 = vld [vmem:[#allocation13 + $0x104] ss:$24 sps:$4 sm:$0xff]  }
 0x3f0   :  { %2513 = vmatprep.subr.bf16.mxu0 %v3114_v40  ;;  %v3140_v40 = vld [vmem:[#allocation13 + $0x100] ss:$24 sps:$4 sm:$0xff]  }
 0x3f2   :  { %2387 = vmatpush1.bf16.msra.mxu1 %v3023_v6  ;;  %v3093_v6 = vld [vmem:[#allocation13 + $0x214] ss:$24 sps:$4 sm:$0xff]  }
 0x3f3   :  { %2389 = vmatprep.subr.bf16.mxu1 %v3024_v7  ;;  %2515 = vmatpush1.bf16.msra.mxu0 %v3116_v41  ;;  %v3095_v7 = vld [vmem:[#allocation13 + $0x210] ss:$24 sps:$4 sm:$0xff]   ;;  %v3141_v41 = vld [vmem:[#allocation13 + $0x134] ss:$24 sps:$4 sm:$0xff]  }
 0x3f4   :  { %2517 = vmatprep.subr.bf16.mxu0 %v3120_v18 }
 0x3f6   :  { %2391 = vmatpush1.bf16.msra.mxu1 %v3026_v8  ;;  %v3099_v8 = vld [vmem:[#allocation13 + $0x244] ss:$24 sps:$4 sm:$0xff]  }
 0x3f7   :  { %2393 = vmatprep.subr.bf16.mxu1 %v3027_v9  ;;  %v3101_v9 = vld [vmem:[#allocation13 + $0x240] ss:$24 sps:$4 sm:$0xff]   ;;  %2519 = vmatpush1.bf16.msra.mxu0 %v3122_v19 }
 0x4ac   :  { %v1076_v43 = vpop.f32.mrb[4].mxu1 }
 0x4ad   :  { %v1077_v44 = vadd.f32 %v1867_v42, %v1076_v43  ;;  %v2079_v45 = vpop.f32.mrb[5].mxu1  ;;  %v3143_v42 = vld [vmem:[#allocation13 + $0x130] ss:$24 sps:$4 sm:$0xff]   ;;  %v3144_v43 = vld [vmem:[#allocation13 + $0x164] ss:$24 sps:$4 sm:$0xff]  }
 0x4ae   :  { %v3147_v45 = vld [vmem:[#allocation13 + $0x194] ss:$24 sps:$4 sm:$0xff]  }
 0x4af   :  { %v1080_v47 = vmax.f32 %v1077_v44, 0.0  ;;  %v3146_v44 = vld [vmem:[#allocation13 + $0x160] ss:$24 sps:$4 sm:$0xff]  }
 0x4b1   :  { %1206 = vmatmul.mubr.f32.vlgmr.msra.gmra.mrb[6].mxu1 %v1080_v47  ;;  %v3150_v47 = vld [vmem:[#allocation13 + $0x1c4] ss:$24 sps:$4 sm:$0xff]  }
 0x4b2   :  { %2395 = vmatpush1.bf16.msra.mxu1 %v3029_v46  ;;  %v3149_v46 = vld [vmem:[#allocation13 + $0x190] ss:$24 sps:$4 sm:$0xff]  }
 0x4b3   :  { %2397 = vmatprep.subr.bf16.mxu1 %v3033_v48  ;;  %v3152_v48 = vld [vmem:[#allocation13 + $0x1c0] ss:$24 sps:$4 sm:$0xff]  }
 0x4b6   :  { %2399 = vmatpush1.bf16.msra.mxu1 %v3035_v49  ;;  %v3153_v49 = vld [vmem:[#allocation13 + $0x1f4] ss:$24 sps:$4 sm:$0xff]  }
 0x4b7   :  { %2401 = vmatprep.subr.bf16.mxu1 %v3039_v50  ;;  %v3155_v50 = vld [vmem:[#allocation13 + $0x1f0] ss:$24 sps:$4 sm:$0xff]  }
 0x4ba   :  { %2403 = vmatpush1.bf16.msra.mxu1 %v3041_v51  ;;  %v3156_v51 = vld [vmem:[#allocation13 + $0x224] ss:$24 sps:$4 sm:$0xff]  }
 0x4bb   :  { %2405 = vmatprep.subr.bf16.mxu1 %v3045_v52  ;;  %v3158_v52 = vld [vmem:[#allocation13 + $0x220] ss:$24 sps:$4 sm:$0xff]  }
 0x4be   :  { %2407 = vmatpush1.bf16.msra.mxu1 %v3047_v53  ;;  %v3159_v53 = vld [vmem:[#allocation13 + $0x254] ss:$24 sps:$4 sm:$0xff]  }
 0x4bf   :  { %2409 = vmatprep.subr.bf16.mxu1 %v3051_v54  ;;  %v3161_v54 = vld [vmem:[#allocation13 + $0x250] ss:$24 sps:$4 sm:$0xff]  }
 0x4c2   :  { %2411 = vmatpush1.bf16.msra.mxu1 %v3053_v55  ;;  %v3162_v55 = vld [vmem:[#allocation13 + $0x284] ss:$24 sps:$4 sm:$0xff]  }
 0x4c3   :  { %2413 = vmatprep.subr.bf16.mxu1 %v3057_v56  ;;  %v3164_v56 = vld [vmem:[#allocation13 + $0x280] ss:$24 sps:$4 sm:$0xff]  }
 0x4c6   :  { %2415 = vmatpush1.bf16.msra.mxu1 %v3059_v57  ;;  %v3165_v57 = vld [vmem:[#allocation13 + $0x2b4] ss:$24 sps:$4 sm:$0xff]  }
 0x4c7   :  { %2417 = vmatprep.subr.bf16.mxu1 %v3063_v58  ;;  %v3167_v58 = vld [vmem:[#allocation13 + $0x2b0] ss:$24 sps:$4 sm:$0xff]  }
 0x4ca   :  { %2419 = vmatpush1.bf16.msra.mxu1 %v3065_v59  ;;  %v3168_v59 = vld [vmem:[#allocation13 + $0x2e4] ss:$24 sps:$4 sm:$0xff]  }
 0x4cb   :  { %2421 = vmatprep.subr.bf16.mxu1 %v3069_v60  ;;  %v3170_v60 = vld [vmem:[#allocation13 + $0x2e0] ss:$24 sps:$4 sm:$0xff]  }
 0x4ce   :  { %2423 = vmatpush1.bf16.msra.mxu1 %v3071_v61 }
 0x4cf   :  { %2425 = vmatprep.subr.bf16.mxu1 %v3075_v62 }
 0x4d2   :  { %2427 = vmatpush1.bf16.msra.mxu1 %v3077_v63 }
 0x4d3   :  { %2429 = vmatprep.subr.bf16.mxu1 %v3081_v0 }
 0x4d6   :  { %2431 = vmatpush1.bf16.msra.mxu1 %v3083_v2 }
 0x4d7   :  { %2433 = vmatprep.subr.bf16.mxu1 %v3087_v4 }
 0x4da   :  { %2435 = vmatpush1.bf16.msra.mxu1 %v3089_v5 }
 0x4db   :  { %2437 = vmatprep.subr.bf16.mxu1 %v3093_v6 }
 0x4de   :  { %2439 = vmatpush1.bf16.msra.mxu1 %v3095_v7 }
 0x4df   :  { %2441 = vmatprep.subr.bf16.mxu1 %v3099_v8 }
 0x4e2   :  { %2443 = vmatpush1.bf16.msra.mxu1 %v3101_v9 }
 0x4e3   :  { %2445 = vmatprep.subr.bf16.mxu1 %v3105_v10 }
 0x4e6   :  { %2447 = vmatpush1.bf16.msra.mxu1 %v3107_v11 }
 0x4e7   :  { %2449 = vmatprep.subr.bf16.mxu1 %v3111_v13 }
 0x4ea   :  { %2451 = vmatpush1.bf16.msra.mxu1 %v3113_v14 }
 0x4eb   :  { %2453 = vmatprep.subr.bf16.mxu1 %v3117_v15 }
 0x4ee   :  { %2455 = vmatpush1.bf16.msra.mxu1 %v3119_v17 }
 0x4ef   :  { %2521 = vmatprep.subr.bf16.mxu1 %v3123_v20 }
 0x584   :  { %v1207_v24 = vpop.f32.mrb[6].mxu1 }
 0x585   :  { %v1208_v25 = vadd.f32 %v1207_v24, %v1134_v22  ;;  %v1209_v26 = vpop.f32.mrb[7].mxu1 }
 0x586   :  { %v1210_v27 = vadd.f32 %v1209_v26, %v1138_v23 }
 0x587   :  { %v3672_v30 = vmax.f32 %v1208_v25, 0.0 }
 0x588   :  { %v1213_v28 = vmax.f32 %v1210_v27, 0.0 }
 0x58a   :  { %1598 = vmatprep.mubr.f32.mxu1 %v1213_v28  ;;  %1669 = vmatprep.mubr.f32.mxu0 %v1213_v28 }
 0x58b   :  { %1599 = vmatmul.mubr.f32.vlgmr.msra.gmra.mrb[8].mxu1 %v3672_v30  ;;  %1670 = vmatmul.mubr.f32.vlgmr.msra.gmra.mrb[2].mxu0 %v3672_v30 }
 0x58c   :  { %2523 = vmatpush1.bf16.msra.mxu1 %v3125_v29  ;;  %1740 = vmatprep.mubr.f32.mxu1 %v1213_v28 }
 0x58d   :  { %2525 = vmatprep.subr.bf16.mxu1 %v3126_v31 }
 0x590   :  { %2527 = vmatpush1.bf16.msra.mxu1 %v3128_v32 }
 0x591   :  { %2529 = vmatprep.subr.bf16.mxu1 %v3129_v33 }
 0x594   :  { %2531 = vmatpush1.bf16.msra.mxu1 %v3131_v34 }
 0x595   :  { %2533 = vmatprep.subr.bf16.mxu1 %v3132_v35 }
 0x598   :  { %2535 = vmatpush1.bf16.msra.mxu1 %v3134_v36 }
 0x599   :  { %2537 = vmatprep.subr.bf16.mxu1 %v3135_v37 }
 0x59c   :  { %2539 = vmatpush1.bf16.msra.mxu1 %v3137_v38 }
 0x59d   :  { %2541 = vmatprep.subr.bf16.mxu1 %v3138_v39 }
 0x5a0   :  { %2543 = vmatpush1.bf16.msra.mxu1 %v3140_v40 }
 0x5a1   :  { %2545 = vmatprep.subr.bf16.mxu1 %v3141_v41 }
 0x5a4   :  { %2547 = vmatpush1.bf16.msra.mxu1 %v3143_v42 }
 0x5a5   :  { %2549 = vmatprep.subr.bf16.mxu1 %v3144_v43 }
 0x5a8   :  { %2551 = vmatpush1.bf16.msra.mxu1 %v3146_v44 }
 0x5a9   :  { %2553 = vmatprep.subr.bf16.mxu1 %v3147_v45 }
 0x5ac   :  { %2555 = vmatpush1.bf16.msra.mxu1 %v3149_v46 }
 0x5ad   :  { %2557 = vmatprep.subr.bf16.mxu1 %v3150_v47 }
 0x5b0   :  { %2559 = vmatpush1.bf16.msra.mxu1 %v3152_v48 }
 0x5b1   :  { %2561 = vmatprep.subr.bf16.mxu1 %v3153_v49 }
 0x5b4   :  { %2563 = vmatpush1.bf16.msra.mxu1 %v3155_v50 }
 0x5b5   :  { %2565 = vmatprep.subr.bf16.mxu1 %v3156_v51 }
 0x5b8   :  { %2567 = vmatpush1.bf16.msra.mxu1 %v3158_v52 }
 0x5b9   :  { %2569 = vmatprep.subr.bf16.mxu1 %v3159_v53 }
 0x5bc   :  { %2571 = vmatpush1.bf16.msra.mxu1 %v3161_v54 }
 0x5bd   :  { %2573 = vmatprep.subr.bf16.mxu1 %v3162_v55 }
 0x5c0   :  { %2575 = vmatpush1.bf16.msra.mxu1 %v3164_v56 }
 0x5c1   :  { %2577 = vmatprep.subr.bf16.mxu1 %v3165_v57 }
 0x5c4   :  { %2579 = vmatpush1.bf16.msra.mxu1 %v3167_v58 }
 0x5c5   :  { %2581 = vmatprep.subr.bf16.mxu1 %v3168_v59 }
 0x5c8   :  { %2583 = vmatpush1.bf16.msra.mxu1 %v3170_v60 }
 0x5cb   :  { %1741 = vmatmul.mubr.f32.vlgmr.msra.gmra.mrb[10].mxu1 %v3672_v30 }
 0x5cc   :  { %3360 = shalt.err (!%p3357_p4)
}
 0x5cd   :  { %s3361_s19 = scalar_lea.hbm %s3739_s15, 32 }
 0x5ce   :  { %p3362_p5 = scmp.ne.s32.totalorder %s3739_s15, %s3361_s19  ;;  %p3365_p6 = scmp.lt.u32.totalorder %s3361_s19, %s3739_s15 }
 0x5d0   :  { %p3367_p7 = pnand %p3365_p6, %p3362_p5 }
 0x5d2   :  { %3370 = shalt.err (!%p3367_p7)
}
 0x5d3   :  { %1839 = dma.vmem_to_hbm [thread:$0]  %s1837_s4, 32, %s3739_s15, [#allocation16]  }
 0x5d4   :  { %s3445_s8 = smov [#allocation17]  }
 0x5d5   :  { %s1846_s30 = sshll.u32 %s3445_s8, 4  ;;  %s1847_s30 = int_to_ptr.vmem [resolvable:$true] %s1846_s30 }
 0x5d6   :  { %s3371_s14 = scalar_lea.vmem %s1847_s30, 32  ;;  %p3376_p9 = scmp.lt.s32.totalorder %s1847_s30, %s1847_s30 }
 0x5d7   :  { %p3372_p8 = scmp.ne.s32.totalorder %s1847_s30, %s3371_s14  ;;  %p3377_p10 = scmp.lt.s32.totalorder %s3371_s14, %s3371_s14 }
 0x5d9   :  { %p3378_p11 = por %p3377_p10, %p3376_p9 }
 0x5db   :  { %p3379_p12 = pnand %p3378_p11, %p3372_p8 }
 0x5dd   :  { %3382 = shalt.err (!%p3379_p12)
}
 0x5de   :  { %s3383_s10 = scalar_lea.hbm %s3740_s16, 32 }
 0x5df   :  { %p3384_p13 = scmp.ne.s32.totalorder %s3740_s16, %s3383_s10  ;;  %p3387_p0 = scmp.lt.u32.totalorder %s3383_s10, %s3740_s16 }
 0x5e1   :  { %p3389_p1 = pnand %p3387_p0, %p3384_p13 }
 0x5e3   :  { %3392 = shalt.err (!%p3389_p1)
}
 0x5e4   :  { %1849 = dma.vmem_to_hbm [thread:$0]  %s1847_s30, 32, %s3740_s16, [#allocation16]   ;;  %v1514_v61 = vsub.s32 2, %v3625_v12  ;;  %v1502_v62 = vld [vmem:[%s3737_s13] sm:$0x3f]  ;;  %v1518_v63 = vsub.s32 3, %v3625_v12 }
 0x5e5   :  { %v1507_v0 = vrot.slane %v1502_v62, %v3643_v1  ;;  %v1511_v4 = vrot.slane %v1502_v62, %v3649_v3  ;;  %v1522_v35 = vsub.s32 4, %v3625_v12  ;;  %v1526_v36 = vsub.s32 5, %v3625_v12  ;;  %s3446_s13 = smov [#allocation14]  }
 0x5e6   :  { %v1515_v2 = vrot.slane %v1502_v62, %v1514_v61  ;;  %v1519_v5 = vrot.slane %v1502_v62, %v1518_v63  ;;  %s1826_s16 = sshll.u32 %s3446_s13, 4  ;;  %s1827_s16 = int_to_ptr.vmem [resolvable:$true] %s1826_s16 }
 0x5e7   :  { %v1523_v37 = vrot.slane %v1502_v62, %v1522_v35  ;;  %v1527_v38 = vrot.slane %v1502_v62, %v1526_v36  ;;  %s3393_s7 = scalar_lea.vmem %s1827_s16, 192  ;;  %p3398_p3 = scmp.lt.s32.totalorder %s1827_s16, %s1827_s16 }
 0x5e8   :  { %p3394_p2 = scmp.ne.s32.totalorder %s1827_s16, %s3393_s7  ;;  %p3399_p4 = scmp.lt.s32.totalorder %s3393_s7, %s3393_s7 }
 0x5ea   :  { %p3400_p5 = por %p3399_p4, %p3398_p3 }
 0x5ec   :  { %p3401_p6 = pnand %p3400_p5, %p3394_p2 }
 0x65e   :  { %v1600_v6 = vpop.f32.mrb[8].mxu1  ;;  %v1671_v7 = vpop.f32.mrb[2].mxu0 }
 0x65f   :  { %v1601_v8 = vadd.f32 %v1600_v6, %v1507_v0  ;;  %v1672_v9 = vadd.f32 %v1671_v7, %v1515_v2  ;;  %v1602_v10 = vpop.f32.mrb[9].mxu1  ;;  %v1673_v11 = vpop.f32.mrb[3].mxu0 }
 0x660   :  { %v1603_v13 = vadd.f32 %v1602_v10, %v1511_v4  ;;  %v1674_v14 = vadd.f32 %v1673_v11, %v1519_v5 }
 0x661   :  { %v1868_v15 = vmul.f32 -1.442695, %v1601_v8  ;;  %v1870_v17 = vmul.f32 -1.442695, %v1672_v9 }
 0x662   :  { %v1869_v18 = vmul.f32 -1.442695, %v1603_v13  ;;  %v1871_v19 = vmul.f32 -1.442695, %v1674_v14 }
 0x663   :  { %3171 = vpow2.f32 %v1868_v15 }
 0x664   :  { %3173 = vpow2.f32 %v1870_v17 }
 0x665   :  { %3175 = vpow2.f32 %v1869_v18 }
 0x666   :  { %3177 = vpow2.f32 %v1871_v19 }
 0x66d   :  { %v3172_v1 = vpop.eup %3171 }
 0x66e   :  { %v3174_v20 = vpop.eup %3173  ;;  %v1765_v3 = vadd.f32 1.0, %v3172_v1 }
 0x66f   :  { %v3176_v21 = vpop.eup %3175  ;;  %v1767_v22 = vadd.f32 1.0, %v3174_v20 }
 0x670   :  { %v3178_v23 = vpop.eup %3177  ;;  %3179 = vrcp.f32 %v1765_v3  ;;  %v1766_v24 = vadd.f32 1.0, %v3176_v21 }
 0x671   :  { %3181 = vrcp.f32 %v1767_v22  ;;  %v1768_v25 = vadd.f32 1.0, %v3178_v23 }
 0x672   :  { %3183 = vrcp.f32 %v1766_v24 }
 0x673   :  { %3185 = vrcp.f32 %v1768_v25 }
 0x67a   :  { %v3180_v26 = vpop.eup %3179 }
 0x67b   :  { %v3182_v27 = vpop.eup %3181 }
 0x67c   :  { %v3184_v28 = vpop.eup %3183 }
 0x67d   :  { %v3186_v29 = vpop.eup %3185  ;;  %v1789_v30 = vcombine.low %v3180_v26, %v3184_v28 }
 0x67e   :  { %v1790_v31 = vcombine.low %v3182_v27, %v3186_v29 }
 0x67f   :  { %v1797_v32 = vrot.slane %v1789_v30, %v3628_v16 }
 0x680   :  { %v1804_v33 = vrot.slane %v1790_v31, %v3628_v16 }
 0x682   :  { %v1805_v34 = vcombine.low %v1797_v32, %v1804_v33 }
 0x684   :  { %1816 = vst [vmem:[#allocation14] sm:$0xff] %v1805_v34 }
 0x69e   :  { %v1742_v39 = vpop.f32.mrb[10].mxu1 }
 0x69f   :  { %v1743_v40 = vadd.f32 %v1742_v39, %v1523_v37  ;;  %v1744_v41 = vpop.f32.mrb[11].mxu1 }
 0x6a0   :  { %v1745_v42 = vadd.f32 %v1744_v41, %v1527_v38 }
 0x6a1   :  { %v1872_v43 = vmul.f32 -1.442695, %v1743_v40 }
 0x6a2   :  { %v1873_v44 = vmul.f32 -1.442695, %v1745_v42 }
 0x6a3   :  { %3187 = vpow2.f32 %v1872_v43 }
 0x6a4   :  { %3189 = vpow2.f32 %v1873_v44 }
 0x6ad   :  { %v3188_v45 = vpop.eup %3187 }
 0x6ae   :  { %v3190_v46 = vpop.eup %3189  ;;  %v1769_v47 = vadd.f32 1.0, %v3188_v45 }
 0x6af   :  { %v1770_v16 = vadd.f32 1.0, %v3190_v46 }
 0x6b0   :  { %3191 = vrcp.f32 %v1769_v47 }
 0x6b1   :  { %3193 = vrcp.f32 %v1770_v16 }
 0x6ba   :  { %v3192_v48 = vpop.eup %3191 }
 0x6bb   :  { %v3194_v12 = vpop.eup %3193 }
 0x6bc   :  { %v1806_v49 = vcombine.low %v3192_v48, %v3194_v12 }
 0x6be   :  { %1874 = vst.sshfl [vmem:[#allocation14 + $0x8] sm:$0x33 pattern:$0x76325410] %v1806_v49 }
 0x6bf   :  { %3404 = shalt.err (!%p3401_p6)
}
 0x6c0   :  { %s3746_s11 = sld [smem:[#allocation25_spill]] }
 0x6c6   :  { %s3405_s4 = scalar_lea.hbm %s3746_s11, 192 }
 0x6c7   :  { %p3406_p7 = scmp.ne.s32.totalorder %s3746_s11, %s3405_s4  ;;  %p3409_p8 = scmp.lt.u32.totalorder %s3405_s4, %s3746_s11 }
 0x6c9   :  { %p3411_p9 = pnand %p3409_p8, %p3406_p7 }
 0x6cb   :  { %3414 = shalt.err (!%p3411_p9)
}
 0x6cc   :  { %1829 = dma.vmem_to_hbm [thread:$0]  %s1827_s16, 192, %s3746_s11, [#allocation4]  }
 0x6cd   :  { %3423 = dma.done.wait [#allocation4], 192  }
 0x6ce   :  { %3424 = vsyncadd [#allocation4], 4294967104 }
 0x6cf   :  { %3425 = dma.done.wait [#allocation16], 64  }
 0x6d0   :  { %3426 = vsyncadd [#allocation16], 4294967232 }
 0x6d1   :  { %1859 = vsyncpa [#allocation3], 1 }
 0x6d2   :  { %1860 = vsyncpa [#allocation6], 1 }
 0x6d3   :  { %1861 = vsyncpa [#allocation9], 1 }
 0x6d4   :  { %1862 = vsyncpa [#allocation12], 1 }
 0x6d5   :  { %1863 = vsyncpa [#allocation4], 1 }
 0x6d6   :  { %1864 = vsyncpa [#allocation16], 1 }

</bundles_post_ra>
